<compile_context>
chip_gen: v7x
topology: tpu7x:2x2x1
jax: 0.10.0
libtpu: 0.0.40
codegen_flags: <defaults>
</compile_context>

<pallas_src>
import functools

import jax
import jax.numpy as jnp
from jax import lax
from jax.experimental import pallas as pl
from jax.experimental.pallas import tpu as pltpu


# ---------------------------------------------------------------------------
# Kernel: one grid step = one of {q, k, v}.
#   x_ref: (B*T, E) resident activations
#   w_ref: (E, E)   weight column slab (pre-transposed layout, streamed)
#   b_ref: (1, E)   bias slab
#   q/k/v_ref: (B, H, T, D) full outputs, resident across the grid
# ---------------------------------------------------------------------------
def _qkv_kernel(x_ref, w_ref, b_ref, q_ref, k_ref, v_ref, *,
                batch, seq, num_heads, head_dim):
    j = pl.program_id(0)   # 0 -> q, 1 -> k, 2 -> v

    # Single wide NN-form matmul on the MXU: (B*T, E) @ (E, E) -> (B*T, E).
    acc = jnp.dot(x_ref[...], w_ref[...], preferred_element_type=jnp.float32)
    # Bias hoisted: one broadcast add for the whole slab.
    acc = (acc + b_ref[...]).astype(q_ref.dtype)

    def write(out_ref):
        # Fold split_heads (view + permute) into the stores.  Every slice
        # start is (8, 128)-aligned (seq % 8 == 0, head_dim % 128 == 0), so
        # these are plain full-lane stores, no masked vst, no XLU work.
        for b in range(batch):
            for h in range(num_heads):
                out_ref[b, h] = acc[b * seq:(b + 1) * seq,
                                    h * head_dim:(h + 1) * head_dim]

    @pl.when(j == 0)
    def _():
        write(q_ref)

    @pl.when(j == 1)
    def _():
        write(k_ref)

    @pl.when(j == 2)
    def _():
        write(v_ref)


# ---------------------------------------------------------------------------
# Wrapper: mirrors qkv.forward(batch_size, positional_embeddings) -> (q, k, v)
#   w: PyTorch nn.Linear weight layout (3E, E), b: (3E,)
# ---------------------------------------------------------------------------
def qkv_forward(batch_size, positional_embeddings, w, b, *, num_heads):
    B, T, E = positional_embeddings.shape
    assert B == batch_size
    assert E % num_heads == 0
    H = num_heads
    D = E // H
    assert w.shape == (3 * E, E) and b.shape == (3 * E,)
    # Lane-dense outputs and aligned in-kernel slices require these:
    assert D % 128 == 0, "head_dim must be a multiple of 128 for full-lane stores"
    assert T % 8 == 0, "seq length must be a multiple of 8 (sublane alignment)"

    # One-time layout prep outside the kernel (cheap, done by XLA once).
    x_flat = positional_embeddings.reshape(B * T, E)   # batch folded into M
    w_t = w.T                                          # (E, 3E) NN-form weight
    b2d = b.reshape(1, 3 * E)

    kernel = functools.partial(_qkv_kernel,
                               batch=B, seq=T, num_heads=H, head_dim=D)

    out_shape = jax.ShapeDtypeStruct((B, H, T, D), positional_embeddings.dtype)
    # Outputs stay resident in VMEM across the whole grid; single writeback.
    out_spec = pl.BlockSpec((B, H, T, D), lambda j: (0, 0, 0, 0))

    flops = 2 * (B * T) * (3 * E) * E
    bytes_accessed = 4 * (B * T * E + 3 * E * E + 3 * E + 3 * B * H * T * D)

    q, k, v = pl.pallas_call(
        kernel,
        out_shape=(out_shape, out_shape, out_shape),
        grid=(3,),                                        # N-tiled: q, k, v slabs
        in_specs=[
            pl.BlockSpec((B * T, E), lambda j: (0, 0)),   # acts: resident, tiny
            pl.BlockSpec((E, E), lambda j: (0, j)),       # weight: streamed slabs
            pl.BlockSpec((1, E), lambda j: (0, j)),       # bias slab
        ],
        out_specs=(out_spec, out_spec, out_spec),
        compiler_params=pltpu.CompilerParams(
            # Outputs are revisited across the grid -> must stay on one core.
            dimension_semantics=("arbitrary",),
            vmem_limit_bytes=32 * 1024 * 1024,
        ),
        cost_estimate=pl.CostEstimate(
            flops=flops, transcendentals=0, bytes_accessed=bytes_accessed),
    )(x_flat, w_t, b2d)
    return q, k, v


# ---------------------------------------------------------------------------
# Pure-JAX reference (mirrors the PyTorch forward exactly)
# ---------------------------------------------------------------------------
def qkv_forward_ref(batch_size, x, w, b, *, num_heads):
    B, T, E = x.shape
    D = E // num_heads
    y = jnp.dot(x, w.T, precision=lax.Precision.HIGHEST) + b   # (B, T, 3E)
    q, k, v = jnp.split(y, 3, axis=-1)

    def split_heads(t):
        return jnp.transpose(t.reshape(batch_size, -1, num_heads, D), (0, 2, 1, 3))

    return split_heads(q), split_heads(k), split_heads(v)


if __name__ == "__main__":
    # Shapes implied by the module: input_embedding_dimensions = 512,
    # num_heads = 2 -> head_dim = 256.  Small batch/seq for the test.
    E = 512
    H = 2
    D = E // H
    B, T = 2, 8

    key = jax.random.PRNGKey(0)
    kx, kw, kb = jax.random.split(key, 3)
    positional_embeddings = jax.random.normal(kx, (B, T, E), dtype=jnp.float32)
    # Deterministic nn.Linear(E, 3E) params (PyTorch layout: W (out,in), b (out,))
    w = jax.random.normal(kw, (3 * E, E), dtype=jnp.float32) * (1.0 / (E ** 0.5))
    b = jax.random.normal(kb, (3 * E,), dtype=jnp.float32) * 0.02

    q, k, v = qkv_forward(B, positional_embeddings, w, b, num_heads=H)
    (q, k, v) = jax.block_until_ready((q, k, v))

    q_r, k_r, v_r = qkv_forward_ref(B, positional_embeddings, w, b, num_heads=H)

    for got, ref in ((q, q_r), (k, k_r), (v, v_r)):
        assert got.shape == (B, H, T, D)
        assert jnp.allclose(got, ref, atol=5e-4, rtol=5e-4), "mismatch vs reference"

    print("KERNEL_OK")
</pallas_src>

<mosaic_0001>
module attributes {stable_mosaic.version = 11 : i64} {
  func.func @_qkv_kernel(%arg0: i32, %arg1: memref<16x512xf32, #tpu.memory_space<vmem>>, %arg2: memref<512x512xf32, #tpu.memory_space<vmem>>, %arg3: memref<1x512xf32, #tpu.memory_space<vmem>>, %arg4: memref<2x2x8x256xf32, #tpu.memory_space<vmem>>, %arg5: memref<2x2x8x256xf32, #tpu.memory_space<vmem>>, %arg6: memref<2x2x8x256xf32, #tpu.memory_space<vmem>>) attributes {dimension_semantics = [#tpu.dimension_semantics<arbitrary>], iteration_bounds = array<i64: 3>, scalar_prefetch = 0 : i64, scratch_operands = 0 : i64, tpu.core_type = #tpu.core_type<tc>, window_params = [{pipeline_mode = #tpu.pipeline_mode<synchronous>, transform_indices = @transform_0, window_bounds = array<i64: 16, 512>}, {transform_indices = @transform_1, window_bounds = array<i64: 512, 512>}, {transform_indices = @transform_2, window_bounds = array<i64: 1, 512>}, {pipeline_mode = #tpu.pipeline_mode<synchronous>, transform_indices = @transform_3, window_bounds = array<i64: 2, 2, 8, 256>}, {pipeline_mode = #tpu.pipeline_mode<synchronous>, transform_indices = @transform_4, window_bounds = array<i64: 2, 2, 8, 256>}, {pipeline_mode = #tpu.pipeline_mode<synchronous>, transform_indices = @transform_5, window_bounds = array<i64: 2, 2, 8, 256>}]} {
    %c0 = arith.constant 0 : index
    %c0_0 = arith.constant 0 : index
    %0 = vector.load %arg1[%c0, %c0_0] : memref<16x512xf32, #tpu.memory_space<vmem>>, vector<16x512xf32>
    %c0_1 = arith.constant 0 : index
    %c0_2 = arith.constant 0 : index
    %1 = vector.load %arg2[%c0_1, %c0_2] : memref<512x512xf32, #tpu.memory_space<vmem>>, vector<512x512xf32>
    %cst = arith.constant dense<0.000000e+00> : vector<16x512xf32>
    %2 = tpu.matmul %0, %1, %cst {dimension_numbers = #tpu.dot_dimension_numbers<[1], [0], [0], [1], [0, 0, 1, 1], [], []>} : vector<16x512xf32>, vector<512x512xf32>, vector<16x512xf32> -> vector<16x512xf32>
    %c0_3 = arith.constant 0 : index
    %c0_4 = arith.constant 0 : index
    %3 = vector.load %arg3[%c0_3, %c0_4] : memref<1x512xf32, #tpu.memory_space<vmem>>, vector<1x512xf32>
    %4 = vector.broadcast %3 : vector<1x512xf32> to vector<16x512xf32>
    %5 = arith.addf %2, %4 : vector<16x512xf32>
    %c0_i32 = arith.constant 0 : i32
    %6 = arith.cmpi eq, %arg0, %c0_i32 : i32
    %7 = arith.extui %6 : i1 to i32
    %c0_i32_5 = arith.constant 0 : i32
    %8 = arith.cmpi ne, %7, %c0_i32_5 : i32
    scf.if %8 {
      %15 = vector.extract_strided_slice %5 {offsets = [0, 0], sizes = [8, 256], strides = [1, 1]} : vector<16x512xf32> to vector<8x256xf32>
      %c0_8 = arith.constant 0 : index
      %c0_9 = arith.constant 0 : index
      %c0_10 = arith.constant 0 : index
      %c0_11 = arith.constant 0 : index
      %16 = vector.load %arg4[%c0_8, %c0_9, %c0_10, %c0_11] : memref<2x2x8x256xf32, #tpu.memory_space<vmem>>, vector<1x1x8x256xf32>
      %17 = vector.shape_cast %16 : vector<1x1x8x256xf32> to vector<8x256xf32>
      %18 = vector.shape_cast %15 : vector<8x256xf32> to vector<1x1x8x256xf32>
      tpu.vector_store %arg4[%c0_8, %c0_9, %c0_10, %c0_11], %18 {strides = array<i32>} : memref<2x2x8x256xf32, #tpu.memory_space<vmem>>, vector<1x1x8x256xf32>,
      %19 = vector.extract_strided_slice %5 {offsets = [0, 256], sizes = [8, 256], strides = [1, 1]} : vector<16x512xf32> to vector<8x256xf32>
      %c0_12 = arith.constant 0 : index
      %c1 = arith.constant 1 : index
      %c0_13 = arith.constant 0 : index
      %c0_14 = arith.constant 0 : index
      %20 = vector.load %arg4[%c0_12, %c1, %c0_13, %c0_14] : memref<2x2x8x256xf32, #tpu.memory_space<vmem>>, vector<1x1x8x256xf32>
      %21 = vector.shape_cast %20 : vector<1x1x8x256xf32> to vector<8x256xf32>
      %22 = vector.shape_cast %19 : vector<8x256xf32> to vector<1x1x8x256xf32>
      tpu.vector_store %arg4[%c0_12, %c1, %c0_13, %c0_14], %22 {strides = array<i32>} : memref<2x2x8x256xf32, #tpu.memory_space<vmem>>, vector<1x1x8x256xf32>,
      %23 = vector.extract_strided_slice %5 {offsets = [8, 0], sizes = [8, 256], strides = [1, 1]} : vector<16x512xf32> to vector<8x256xf32>
      %c1_15 = arith.constant 1 : index
      %c0_16 = arith.constant 0 : index
      %c0_17 = arith.constant 0 : index
      %c0_18 = arith.constant 0 : index
      %24 = vector.load %arg4[%c1_15, %c0_16, %c0_17, %c0_18] : memref<2x2x8x256xf32, #tpu.memory_space<vmem>>, vector<1x1x8x256xf32>
      %25 = vector.shape_cast %24 : vector<1x1x8x256xf32> to vector<8x256xf32>
      %26 = vector.shape_cast %23 : vector<8x256xf32> to vector<1x1x8x256xf32>
      tpu.vector_store %arg4[%c1_15, %c0_16, %c0_17, %c0_18], %26 {strides = array<i32>} : memref<2x2x8x256xf32, #tpu.memory_space<vmem>>, vector<1x1x8x256xf32>,
      %27 = vector.extract_strided_slice %5 {offsets = [8, 256], sizes = [8, 256], strides = [1, 1]} : vector<16x512xf32> to vector<8x256xf32>
      %c1_19 = arith.constant 1 : index
      %c1_20 = arith.constant 1 : index
      %c0_21 = arith.constant 0 : index
      %c0_22 = arith.constant 0 : index
      %28 = vector.load %arg4[%c1_19, %c1_20, %c0_21, %c0_22] : memref<2x2x8x256xf32, #tpu.memory_space<vmem>>, vector<1x1x8x256xf32>
      %29 = vector.shape_cast %28 : vector<1x1x8x256xf32> to vector<8x256xf32>
      %30 = vector.shape_cast %27 : vector<8x256xf32> to vector<1x1x8x256xf32>
      tpu.vector_store %arg4[%c1_19, %c1_20, %c0_21, %c0_22], %30 {strides = array<i32>} : memref<2x2x8x256xf32, #tpu.memory_space<vmem>>, vector<1x1x8x256xf32>,
    } else {
    }
    %c1_i32 = arith.constant 1 : i32
    %9 = arith.cmpi eq, %arg0, %c1_i32 : i32
    %10 = arith.extui %9 : i1 to i32
    %c0_i32_6 = arith.constant 0 : i32
    %11 = arith.cmpi ne, %10, %c0_i32_6 : i32
    scf.if %11 {
      %15 = vector.extract_strided_slice %5 {offsets = [0, 0], sizes = [8, 256], strides = [1, 1]} : vector<16x512xf32> to vector<8x256xf32>
      %c0_8 = arith.constant 0 : index
      %c0_9 = arith.constant 0 : index
      %c0_10 = arith.constant 0 : index
      %c0_11 = arith.constant 0 : index
      %16 = vector.load %arg5[%c0_8, %c0_9, %c0_10, %c0_11] : memref<2x2x8x256xf32, #tpu.memory_space<vmem>>, vector<1x1x8x256xf32>
      %17 = vector.shape_cast %16 : vector<1x1x8x256xf32> to vector<8x256xf32>
      %18 = vector.shape_cast %15 : vector<8x256xf32> to vector<1x1x8x256xf32>
      tpu.vector_store %arg5[%c0_8, %c0_9, %c0_10, %c0_11], %18 {strides = array<i32>} : memref<2x2x8x256xf32, #tpu.memory_space<vmem>>, vector<1x1x8x256xf32>,
      %19 = vector.extract_strided_slice %5 {offsets = [0, 256], sizes = [8, 256], strides = [1, 1]} : vector<16x512xf32> to vector<8x256xf32>
      %c0_12 = arith.constant 0 : index
      %c1 = arith.constant 1 : index
      %c0_13 = arith.constant 0 : index
      %c0_14 = arith.constant 0 : index
      %20 = vector.load %arg5[%c0_12, %c1, %c0_13, %c0_14] : memref<2x2x8x256xf32, #tpu.memory_space<vmem>>, vector<1x1x8x256xf32>
      %21 = vector.shape_cast %20 : vector<1x1x8x256xf32> to vector<8x256xf32>
      %22 = vector.shape_cast %19 : vector<8x256xf32> to vector<1x1x8x256xf32>
      tpu.vector_store %arg5[%c0_12, %c1, %c0_13, %c0_14], %22 {strides = array<i32>} : memref<2x2x8x256xf32, #tpu.memory_space<vmem>>, vector<1x1x8x256xf32>,
      %23 = vector.extract_strided_slice %5 {offsets = [8, 0], sizes = [8, 256], strides = [1, 1]} : vector<16x512xf32> to vector<8x256xf32>
      %c1_15 = arith.constant 1 : index
      %c0_16 = arith.constant 0 : index
      %c0_17 = arith.constant 0 : index
      %c0_18 = arith.constant 0 : index
      %24 = vector.load %arg5[%c1_15, %c0_16, %c0_17, %c0_18] : memref<2x2x8x256xf32, #tpu.memory_space<vmem>>, vector<1x1x8x256xf32>
      %25 = vector.shape_cast %24 : vector<1x1x8x256xf32> to vector<8x256xf32>
      %26 = vector.shape_cast %23 : vector<8x256xf32> to vector<1x1x8x256xf32>
      tpu.vector_store %arg5[%c1_15, %c0_16, %c0_17, %c0_18], %26 {strides = array<i32>} : memref<2x2x8x256xf32, #tpu.memory_space<vmem>>, vector<1x1x8x256xf32>,
      %27 = vector.extract_strided_slice %5 {offsets = [8, 256], sizes = [8, 256], strides = [1, 1]} : vector<16x512xf32> to vector<8x256xf32>
      %c1_19 = arith.constant 1 : index
      %c1_20 = arith.constant 1 : index
      %c0_21 = arith.constant 0 : index
      %c0_22 = arith.constant 0 : index
      %28 = vector.load %arg5[%c1_19, %c1_20, %c0_21, %c0_22] : memref<2x2x8x256xf32, #tpu.memory_space<vmem>>, vector<1x1x8x256xf32>
      %29 = vector.shape_cast %28 : vector<1x1x8x256xf32> to vector<8x256xf32>
      %30 = vector.shape_cast %27 : vector<8x256xf32> to vector<1x1x8x256xf32>
      tpu.vector_store %arg5[%c1_19, %c1_20, %c0_21, %c0_22], %30 {strides = array<i32>} : memref<2x2x8x256xf32, #tpu.memory_space<vmem>>, vector<1x1x8x256xf32>,
    } else {
    }
    %c2_i32 = arith.constant 2 : i32
    %12 = arith.cmpi eq, %arg0, %c2_i32 : i32
    %13 = arith.extui %12 : i1 to i32
    %c0_i32_7 = arith.constant 0 : i32
    %14 = arith.cmpi ne, %13, %c0_i32_7 : i32
    scf.if %14 {
      %15 = vector.extract_strided_slice %5 {offsets = [0, 0], sizes = [8, 256], strides = [1, 1]} : vector<16x512xf32> to vector<8x256xf32>
      %c0_8 = arith.constant 0 : index
      %c0_9 = arith.constant 0 : index
      %c0_10 = arith.constant 0 : index
      %c0_11 = arith.constant 0 : index
      %16 = vector.load %arg6[%c0_8, %c0_9, %c0_10, %c0_11] : memref<2x2x8x256xf32, #tpu.memory_space<vmem>>, vector<1x1x8x256xf32>
      %17 = vector.shape_cast %16 : vector<1x1x8x256xf32> to vector<8x256xf32>
      %18 = vector.shape_cast %15 : vector<8x256xf32> to vector<1x1x8x256xf32>
      tpu.vector_store %arg6[%c0_8, %c0_9, %c0_10, %c0_11], %18 {strides = array<i32>} : memref<2x2x8x256xf32, #tpu.memory_space<vmem>>, vector<1x1x8x256xf32>,
      %19 = vector.extract_strided_slice %5 {offsets = [0, 256], sizes = [8, 256], strides = [1, 1]} : vector<16x512xf32> to vector<8x256xf32>
      %c0_12 = arith.constant 0 : index
      %c1 = arith.constant 1 : index
      %c0_13 = arith.constant 0 : index
      %c0_14 = arith.constant 0 : index
      %20 = vector.load %arg6[%c0_12, %c1, %c0_13, %c0_14] : memref<2x2x8x256xf32, #tpu.memory_space<vmem>>, vector<1x1x8x256xf32>
      %21 = vector.shape_cast %20 : vector<1x1x8x256xf32> to vector<8x256xf32>
      %22 = vector.shape_cast %19 : vector<8x256xf32> to vector<1x1x8x256xf32>
      tpu.vector_store %arg6[%c0_12, %c1, %c0_13, %c0_14], %22 {strides = array<i32>} : memref<2x2x8x256xf32, #tpu.memory_space<vmem>>, vector<1x1x8x256xf32>,
      %23 = vector.extract_strided_slice %5 {offsets = [8, 0], sizes = [8, 256], strides = [1, 1]} : vector<16x512xf32> to vector<8x256xf32>
      %c1_15 = arith.constant 1 : index
      %c0_16 = arith.constant 0 : index
      %c0_17 = arith.constant 0 : index
      %c0_18 = arith.constant 0 : index
      %24 = vector.load %arg6[%c1_15, %c0_16, %c0_17, %c0_18] : memref<2x2x8x256xf32, #tpu.memory_space<vmem>>, vector<1x1x8x256xf32>
      %25 = vector.shape_cast %24 : vector<1x1x8x256xf32> to vector<8x256xf32>
      %26 = vector.shape_cast %23 : vector<8x256xf32> to vector<1x1x8x256xf32>
      tpu.vector_store %arg6[%c1_15, %c0_16, %c0_17, %c0_18], %26 {strides = array<i32>} : memref<2x2x8x256xf32, #tpu.memory_space<vmem>>, vector<1x1x8x256xf32>,
      %27 = vector.extract_strided_slice %5 {offsets = [8, 256], sizes = [8, 256], strides = [1, 1]} : vector<16x512xf32> to vector<8x256xf32>
      %c1_19 = arith.constant 1 : index
      %c1_20 = arith.constant 1 : index
      %c0_21 = arith.constant 0 : index
      %c0_22 = arith.constant 0 : index
      %28 = vector.load %arg6[%c1_19, %c1_20, %c0_21, %c0_22] : memref<2x2x8x256xf32, #tpu.memory_space<vmem>>, vector<1x1x8x256xf32>
      %29 = vector.shape_cast %28 : vector<1x1x8x256xf32> to vector<8x256xf32>
      %30 = vector.shape_cast %27 : vector<8x256xf32> to vector<1x1x8x256xf32>
      tpu.vector_store %arg6[%c1_19, %c1_20, %c0_21, %c0_22], %30 {strides = array<i32>} : memref<2x2x8x256xf32, #tpu.memory_space<vmem>>, vector<1x1x8x256xf32>,
    } else {
    }
    return
  }
  func.func @transform_0(%arg0: i32) -> (i32, i32) {
    %c0_i32 = arith.constant 0 : i32
    %c0_i32_0 = arith.constant 0 : i32
    %c0_i32_1 = arith.constant 0 : i32
    return %c0_i32, %c0_i32_0 : i32, i32
  }
  func.func @transform_1(%arg0: i32) -> (i32, i32) {
    %c0_i32 = arith.constant 0 : i32
    %c0_i32_0 = arith.constant 0 : i32
    return %c0_i32, %arg0 : i32, i32
  }
  func.func @transform_2(%arg0: i32) -> (i32, i32) {
    %c0_i32 = arith.constant 0 : i32
    %c0_i32_0 = arith.constant 0 : i32
    return %c0_i32, %arg0 : i32, i32
  }
  func.func @transform_3(%arg0: i32) -> (i32, i32, i32, i32) {
    %c0_i32 = arith.constant 0 : i32
    %c0_i32_0 = arith.constant 0 : i32
    %c0_i32_1 = arith.constant 0 : i32
    %c0_i32_2 = arith.constant 0 : i32
    %c0_i32_3 = arith.constant 0 : i32
    return %c0_i32, %c0_i32_0, %c0_i32_1, %c0_i32_2 : i32, i32, i32, i32
  }
  func.func @transform_4(%arg0: i32) -> (i32, i32, i32, i32) {
    %c0_i32 = arith.constant 0 : i32
    %c0_i32_0 = arith.constant 0 : i32
    %c0_i32_1 = arith.constant 0 : i32
    %c0_i32_2 = arith.constant 0 : i32
    %c0_i32_3 = arith.constant 0 : i32
    return %c0_i32, %c0_i32_0, %c0_i32_1, %c0_i32_2 : i32, i32, i32, i32
  }
  func.func @transform_5(%arg0: i32) -> (i32, i32, i32, i32) {
    %c0_i32 = arith.constant 0 : i32
    %c0_i32_0 = arith.constant 0 : i32
    %c0_i32_1 = arith.constant 0 : i32
    %c0_i32_2 = arith.constant 0 : i32
    %c0_i32_3 = arith.constant 0 : i32
    return %c0_i32, %c0_i32_0, %c0_i32_1, %c0_i32_2 : i32, i32, i32, i32
  }
}

</mosaic_0001>

<bundles_post_ra>
// kernel: tpu_custom_call.1
= control target key start
LH: loop header
LB: loop body
LE: loop exit
PB: predicated region body
PF: predicated region fallthrough
CT: control target
= control target key end

     0   :  { %11 = vsyncpa [#allocation3], 0  ;;  %s2213_s0 = inlined_call_operand.hbm [shape: f32[16,512], index: 0, kind: input, shape index: {}]   ;;  %s2214_s1 = inlined_call_operand.hbm [shape: f32[512,1536], index: 1, kind: input, shape index: {}]   ;;  %s2215_s2 = inlined_call_operand.hbm [shape: f32[1,1536], index: 2, kind: input, shape index: {}]   ;;  %s2216_s3 = inlined_call_operand.hbm [shape: f32[2,2,8,256], index: 3, kind: output, shape index: {0}]   ;;  %s2217_s4 = inlined_call_operand.hbm [shape: f32[2,2,8,256], index: 4, kind: output, shape index: {1}]   ;;  %s2218_s5 = inlined_call_operand.hbm [shape: f32[2,2,8,256], index: 5, kind: output, shape index: {2}]  }
   0x1   :  { %12 = vsyncpa [#allocation6], 0 }
   0x2   :  { %14 = vsyncpa [#allocation6 + $0x1], 0 }
   0x3   :  { %15 = vsyncpa [#allocation4], 0 }
   0x4   :  { %16 = vsyncpa [#allocation10], 0  ;;  %s1691_s18 = smov 0   ;;  %s1693_s19 = smov 0  }
   0x5   :  { %s1695_s20 = smov 0   ;;  %s1697_s21 = smov 0  }
   0x6 LB: > { %s1712_s22 = sadd.s32 1, %s1648_s21   ;;  %s50_s23 = sadd.s32 1, %s1644_s20  ;;  %s1648_s21 = sphi %s1697_s21, %s2240_s21   ;;  %s1644_s20 = sphi %s1695_s20, %s2239_s20   ;;  %s1640_s19 = sphi %s1693_s19, %s2238_s19   ;;  %s1636_s18 = sphi %s1691_s18, %s2237_s18  }
   0x7   : > { %s47_s24 = ssub.s32 %s1648_s21, %s1712_s22  ;;  %p57_p0 = scmp.ne.s32.totalorder %s1644_s20, %s1640_s19 }
   0x8   : > { %p48_p1 = scmp.eq.s32.totalorder %s47_s24, 0  ;;  %p58_p2 = scmp.eq.s32.totalorder %s1648_s21, 0 }
   0x9   : > { %p1387_p4 = scmp.lt.s32.totalorder %s1648_s21, 3  ;;  %s189_s26 = sand.u32 1, %s1648_s21  }
   0xa   : > { %s1721_s25 = scalar_select %p48_p1, %s1644_s20, %s50_s23  }
   0xb   : > { %p59_p3 = por %p58_p2, %p57_p0  ;;  %s191_s27 = sand.u32 1, %s1644_s20  }
   0xc   : > { %s1060_s28 = sshll.u32 %s191_s27, 11  ;;  %s1081_s29 = sshll.u32 %s1648_s21, 9 }
   0xd   : > { %s1732_s7 = scalar_lea.hbm %s2214_s1, %s1081_s29  ;;  %s193_s8 = scalar_lea.vmem [#allocation5], %s1060_s28 }
   0xe   : > { %s200_s9 = sshll.u32 %s193_s8, 4  ;;  %p1734_p5 = pnand %p1387_p4, %p59_p3  ;;  %s1738_s9 = int_to_ptr.vmem [resolvable:$true] %s200_s9 }
   0xf   : > { %s1740_s11 = scalar_lea.sflag [#allocation6], %s189_s26  ;;  %s1436_s12 = scalar_lea.hbm %s1732_s7, 32768 }
  0x10   : > { %s2225_s10 = scalar_select %p1734_p5, 1, 0 }
  0x11   : > { %p1437_p6 = scmp.ne.s32.totalorder %s1732_s7, %s1436_s12  ;;  %p2220_p7 = pneg %p1734_p5 }
  0x12   : > { %s1441_s15 = scalar_lea.hbm %s2214_s1, 98304  ;;  %p1442_p10 = scmp.lt.u32.totalorder %s1732_s7, %s2214_s1 }
  0x13   : > { %p1439_p8 = pnand %p2220_p7, %p1437_p6  ;;  %p1443_p11 = scmp.lt.u32.totalorder %s1441_s15, %s1436_s12 }
  0x14   : > { %p1445_p13 = scmp.lt.u32.totalorder %s1436_s12, %s1732_s7 }
  0x15   : > { %p1440_p9 = pneg %p1439_p8  ;;  %p1444_p12 = por %p1443_p11, %p1442_p10 }
  0x17   : > { %p1446_p0 = por %p1445_p13, %p1444_p12 }
  0x19   : > { %p1447_p1 = pnand %p1446_p0, %p1440_p9 }
  0x1b   : > { %1450 = shalt.err (!%p1447_p1)
}
  0x1c   : > { %s1451_s23 = scalar_lea.vmem %s1738_s9, 32768  ;;  %s1650_s24 = smov [#allocation5]  }
  0x1d   : > { %p1452_p2 = scmp.ne.s32.totalorder %s1738_s9, %s1451_s23  ;;  %s1456_s26 = sshll.u32 %s1650_s24, 4  ;;  %s1457_s26 = int_to_ptr.vmem [resolvable:$false] %s1456_s26 }
  0x1e   : > { %s1458_s28 = scalar_lea.vmem %s1457_s26, 65536  ;;  %p1459_p6 = scmp.lt.s32.totalorder %s1738_s9, %s1457_s26 }
  0x1f   : > { %p1454_p3 = pnand %p1452_p2, %p2220_p7  ;;  %p1460_p8 = scmp.lt.s32.totalorder %s1458_s28, %s1451_s23 }
  0x21   : > { %p1455_p4 = pneg %p1454_p3  ;;  %p1461_p10 = por %p1460_p8, %p1459_p6 }
  0x23   : > { %p1462_p11 = pnand %p1461_p10, %p1455_p4 }
  0x25   : > { %1465 = shalt.err (!%p1462_p11)
}
  0x26   : > { %s1651_s29 = smov 1536   ;;  %s1652_s30 = smov 512  }
  0x27   : > { %s1653_s6 = smov 32   ;;  %s1771_s8 = sadd.s32 4294967295, %s1648_s21  }
  0x28   : > { %1382 = dma.hbm_to_vmem [thread:$0]  (!%p1734_p5), %s1732_s7, 32768, %s1738_s9, %s1740_s11, %s1651_s29, %s1652_s30, %s1653_s6  }
  0x29   : > { %p63_p9 = scmp.ne.s32.totalorder %s1640_s19, %s1636_s18  ;;  %p2219_p12 = scmp.eq.s32.totalorder %s1771_s8, 0 }
  0x2a   : > { %p1057_p13 = scmp.ge.s32.totalorder %s1648_s21, 1  ;;  %p163_p0 = scmp.lt.s32.totalorder %s1648_s21, 4 }
  0x2b   : > { %p1780_p1 = por %p2219_p12, %p63_p9  ;;  %s1654_s7 = smov [#allocation2]  }
  0x2c   : > { %p1785_p3 = pnand %p1057_p13, %p163_p0  ;;  %s175_s9 = sshll.u32 %s1654_s7, 4  ;;  %s176_s9 = int_to_ptr.vmem [resolvable:$true] %s175_s9 }
  0x2d   : > { %s2226_s12 = scalar_select %p1780_p1, 1, 0 }
  0x2e   : > { %s2227_s13 = scalar_select %p1785_p3, 1, 0 }
  0x2f   : > { %s1063_s14 = sshll.u32 %s191_s27, 2  ;;  %p1375_p4 = pneg %p1785_p3 }
  0x30   : > { %s1082_s18 = sshll.u32 %s1648_s21, 6  ;;  %s214_s24 = scalar_lea.vmem [#allocation7], %s1063_s14 }
  0x31   : > { %p1796_p6 = pnand %p1375_p4, %p2219_p12  ;;  %s1803_s23 = scalar_lea.hbm %s2215_s2, %s1082_s18 }
  0x32   : > { %s222_s26 = sshll.u32 %s214_s24, 4  ;;  %s1466_s21 = scalar_lea.hbm %s2213_s0, 1024  ;;  %s1805_s26 = int_to_ptr.vmem [resolvable:$true] %s222_s26 }
  0x33   : > { %p1467_p8 = scmp.ne.s32.totalorder %s2213_s0, %s1466_s21  ;;  %p1468_p10 = pneg %p1796_p6 }
  0x34   : > { %p1473_p13 = scmp.lt.u32.totalorder %s1466_s21, %s2213_s0 }
  0x35   : > { %p1469_p11 = pnand %p1468_p10, %p1467_p8 }
  0x37   : > { %p1470_p9 = pneg %p1469_p11 }
  0x39   : > { %p1475_p0 = pnand %p1473_p13, %p1470_p9 }
  0x3b   : > { %1478 = shalt.err (!%p1475_p0)
}
  0x3c   : > { %s1479_s14 = scalar_lea.vmem %s176_s9, 1024  ;;  %p1487_p7 = scmp.lt.s32.totalorder %s176_s9, %s176_s9 }
  0x3d   : > { %p1480_p4 = scmp.ne.s32.totalorder %s176_s9, %s1479_s14  ;;  %p1488_p1 = scmp.lt.s32.totalorder %s1479_s14, %s1479_s14 }
  0x3f   : > { %p1482_p2 = pnand %p1480_p4, %p1468_p10  ;;  %p1489_p3 = por %p1488_p1, %p1487_p7 }
  0x41   : > { %p1483_p12 = pneg %p1482_p2 }
  0x43   : > { %p1490_p5 = pnand %p1489_p3, %p1483_p12 }
  0x45   : > { %1493 = shalt.err (!%p1490_p5)
}
  0x46   : > { %1378 = dma.hbm_to_vmem [thread:$0]  (!%p1796_p6), %s2213_s0, 1024, %s176_s9, [#allocation3], %s1652_s30, %s1652_s30, %s1653_s6  }
  0x47   : > { %s1494_s27 = scalar_lea.hbm %s1803_s23, 64  ;;  %p2229_p8 = scmp.ne.s32.totalorder %s2225_s10, 0 }
  0x48   : > { %p1495_p2 = scmp.ne.s32.totalorder %s1803_s23, %s1494_s27  ;;  %s1499_s21 = scalar_lea.hbm %s2215_s2, 192 }
  0x49   : > { %p2230_p7 = pneg %p2229_p8  ;;  %p1500_p1 = scmp.lt.u32.totalorder %s1803_s23, %s2215_s2 }
  0x4a   : > { %p1501_p3 = scmp.lt.u32.totalorder %s1499_s21, %s1494_s27  ;;  %p1503_p11 = scmp.lt.u32.totalorder %s1494_s27, %s1803_s23 }
  0x4b   : > { %p1497_p12 = pnand %p1495_p2, %p2230_p7 }
  0x4c   : > { %p1502_p10 = por %p1501_p3, %p1500_p1 }
  0x4d   : > { %p1498_p5 = pneg %p1497_p12 }
  0x4e   : > { %p1504_p9 = por %p1503_p11, %p1502_p10 }
  0x50   : > { %p1505_p13 = pnand %p1504_p9, %p1498_p5 }
  0x52   : > { %1508 = shalt.err (!%p1505_p13)
}
  0x53   : > { %s1509_s30 = scalar_lea.vmem %s1805_s26, 64  ;;  %p2231_p0 = pmov %p2230_p7 }
  0x54   : > { %p1510_p6 = scmp.ne.s32.totalorder %s1805_s26, %s1509_s30  ;;  %s1655_s6 = smov [#allocation7]  }
  0x55   : > { %s1514_s9 = sshll.u32 %s1655_s6, 4  ;;  %s1515_s9 = int_to_ptr.vmem [resolvable:$false] %s1514_s9 }
  0x56   : > { %p1512_p4 = pnand %p1510_p6, %p2231_p0  ;;  %s1516_s16 = scalar_lea.vmem %s1515_s9, 128 }
  0x57   : > { %p1517_p7 = scmp.lt.s32.totalorder %s1805_s26, %s1515_s9  ;;  %p1518_p12 = scmp.lt.s32.totalorder %s1516_s16, %s1509_s30 }
  0x58   : > { %p1513_p2 = pneg %p1512_p4 }
  0x59   : > { %p1519_p1 = por %p1518_p12, %p1517_p7 }
  0x5b   : > { %p1520_p3 = pnand %p1519_p1, %p1513_p2 }
  0x5d   : > { %1523 = shalt.err (!%p1520_p3)
}
  0x5e   : > { %1385 = dma.hbm_to_vmem [thread:$0]  (!%p2229_p8), %s1803_s23, 64, %s1805_s26, %s1740_s11  }
  0x5f   : > { %p2232_p5 = scmp.ne.s32.totalorder %s2227_s13, 0 }
  0x60   : > { %p2233_p10 = scmp.eq.s32.totalorder (!%p2232_p5), %s1771_s8, 0 }
  0x61   : > { %231 = sbr.rel (%p2232_p5) target bundleno = 553 (0x229), region = 32 }
  0x68   : > { %1619 = dma.done.wait (%p2233_p10), [#allocation3], 1024   ;;  %p2234_p11 = pmov %p2233_p10 }
  0x69   : > { %s237_s17 = sand.u32 1, %s1771_s8   ;;  %s239_s14 = sand.u32 1, %s1640_s19  }
  0x6a   : > { %1621 = vsyncadd (%p2234_p11), [#allocation3], 4294966272  ;;  %s1068_s10 = sshll.u32 %s239_s14, 11  ;;  %s238_s18 = scalar_lea.sflag [#allocation6], %s237_s17 }
  0x6b   : > { %s1860_s24 = scalar_lea.vmem [#allocation5], %s1068_s10  ;;  %p2235_p8 = scmp.ne.s32.totalorder %s2226_s12, 0 }
  0x6d   : > { %1623 = dma.done.wait (%p2235_p8), %s238_s18, 32832  }
  0x6e   : > { %1625 = vsyncadd (%p2235_p8), %s238_s18, 4294934464  ;;  %v288_v0 = vld [vmem:[%s1860_s24 + $0x8] sm:$0xff]  ;;  %v290_v2 = vld [vmem:[%s1860_s24 + $0x18] sm:$0xff]  ;;  %s1069_s11 = sshll.u32 %s239_s14, 2  ;;  %p2236_p9 = scmp.ne.s32.totalorder %s1771_s8, 0 }
  0x6f   : > { %v292_v1 = vld [vmem:[%s1860_s24 + $0x28] sm:$0xff]  ;;  %v294_v4 = vld [vmem:[%s1860_s24 + $0x38] sm:$0xff]  ;;  %v287_v5 = vld [vmem:[%s1860_s24] sm:$0xff]  ;;  %s250_s12 = scalar_lea.vmem [#allocation7], %s1069_s11 }
  0x70   : > { %v1083_v3 = vpack.c.bf16 %v292_v1, %v288_v0  ;;  %v291_v6 = vld [vmem:[%s1860_s24 + $0x20] sm:$0xff]  ;;  %v1211_v7 = vpack.c.bf16 %v294_v4, %v290_v2  ;;  %v289_v9 = vld [vmem:[%s1860_s24 + $0x10] sm:$0xff]  ;;  %v296_v11 = vld [vmem:[%s1860_s24 + $0x48] sm:$0xff] }
  0x71   : > { %v1085_v8 = vpack.c.bf16 %v291_v6, %v287_v5  ;;  %v293_v10 = vld [vmem:[%s1860_s24 + $0x30] sm:$0xff]  ;;  %v300_v13 = vld [vmem:[%s1860_s24 + $0x68] sm:$0xff]  ;;  %v298_v14 = vld [vmem:[%s1860_s24 + $0x58] sm:$0xff] }
  0x72   : > { %1084 = vmatprep.subr.bf16.mxu0 %v1083_v3  ;;  %v1213_v12 = vpack.c.bf16 %v293_v10, %v289_v9  ;;  %v302_v15 = vld [vmem:[%s1860_s24 + $0x78] sm:$0xff]  ;;  %1212 = vmatprep.subr.bf16.mxu1 %v1211_v7  ;;  %v1087_v16 = vpack.c.bf16 %v300_v13, %v296_v11  ;;  %v295_v18 = vld [vmem:[%s1860_s24 + $0x40] sm:$0xff]  ;;  %v297_v20 = vld [vmem:[%s1860_s24 + $0x50] sm:$0xff] }
  0x73   : > { %1086 = vmatpush1.bf16.msra.mxu0 %v1085_v8  ;;  %v1215_v17 = vpack.c.bf16 %v302_v15, %v298_v14  ;;  %v299_v19 = vld [vmem:[%s1860_s24 + $0x60] sm:$0xff]  ;;  %v301_v22 = vld [vmem:[%s1860_s24 + $0x70] sm:$0xff]  ;;  %v304_v23 = vld [vmem:[%s1860_s24 + $0x88] sm:$0xff] }
  0x74   : > { %1214 = vmatpush1.bf16.msra.mxu1 %v1213_v12  ;;  %v1089_v21 = vpack.c.bf16 %v299_v19, %v295_v18  ;;  %v308_v24 = vld [vmem:[%s1860_s24 + $0xa8] sm:$0xff]  ;;  %1088 = vmatprep.subr.bf16.mxu0 %v1087_v16  ;;  %v1217_v25 = vpack.c.bf16 %v301_v22, %v297_v20  ;;  %v306_v27 = vld [vmem:[%s1860_s24 + $0x98] sm:$0xff]  ;;  %v303_v29 = vld [vmem:[%s1860_s24 + $0x80] sm:$0xff] }
  0x75   : > { %1216 = vmatprep.subr.bf16.mxu1 %v1215_v17  ;;  %v1091_v26 = vpack.c.bf16 %v308_v24, %v304_v23  ;;  %v310_v28 = vld [vmem:[%s1860_s24 + $0xb8] sm:$0xff]  ;;  %v307_v31 = vld [vmem:[%s1860_s24 + $0xa0] sm:$0xff]  ;;  %v305_v32 = vld [vmem:[%s1860_s24 + $0x90] sm:$0xff] }
  0x76   : > { %v1219_v30 = vpack.c.bf16 %v310_v28, %v306_v27  ;;  %v309_v33 = vld [vmem:[%s1860_s24 + $0xb0] sm:$0xff]  ;;  %v1093_v34 = vpack.c.bf16 %v307_v31, %v303_v29  ;;  %v312_v35 = vld [vmem:[%s1860_s24 + $0xc8] sm:$0xff]  ;;  %v314_v37 = vld [vmem:[%s1860_s24 + $0xd8] sm:$0xff] }
  0x77   : > { %1090 = vmatpush1.bf16.msra.mxu0 %v1089_v21  ;;  %v316_v36 = vld [vmem:[%s1860_s24 + $0xe8] sm:$0xff]  ;;  %v1221_v38 = vpack.c.bf16 %v309_v33, %v305_v32  ;;  %v318_v40 = vld [vmem:[%s1860_s24 + $0xf8] sm:$0xff]  ;;  %v311_v41 = vld [vmem:[%s1860_s24 + $0xc0] sm:$0xff] }
  0x78   : > { %1218 = vmatpush1.bf16.msra.mxu1 %v1217_v25  ;;  %1092 = vmatprep.subr.bf16.mxu0 %v1091_v26  ;;  %v1095_v39 = vpack.c.bf16 %v316_v36, %v312_v35  ;;  %v315_v42 = vld [vmem:[%s1860_s24 + $0xe0] sm:$0xff]  ;;  %v1223_v43 = vpack.c.bf16 %v318_v40, %v314_v37  ;;  %v313_v44 = vld [vmem:[%s1860_s24 + $0xd0] sm:$0xff]  ;;  %v320_v46 = vld [vmem:[%s1860_s24 + $0x108] sm:$0xff] }
  0x79   : > { %1220 = vmatprep.subr.bf16.mxu1 %v1219_v30  ;;  %v317_v45 = vld [vmem:[%s1860_s24 + $0xf0] sm:$0xff]  ;;  %v324_v47 = vld [vmem:[%s1860_s24 + $0x128] sm:$0xff]  ;;  %v322_v48 = vld [vmem:[%s1860_s24 + $0x118] sm:$0xff]  ;;  %v1097_v50 = vpack.c.bf16 %v315_v42, %v311_v41 }
  0x7a   : > { %v326_v49 = vld [vmem:[%s1860_s24 + $0x138] sm:$0xff]  ;;  %v1225_v51 = vpack.c.bf16 %v317_v45, %v313_v44  ;;  %v1099_v52 = vpack.c.bf16 %v324_v47, %v320_v46  ;;  %v319_v53 = vld [vmem:[%s1860_s24 + $0x100] sm:$0xff]  ;;  %v321_v55 = vld [vmem:[%s1860_s24 + $0x110] sm:$0xff] }
  0x7b   : > { %1094 = vmatpush1.bf16.msra.mxu0 %v1093_v34  ;;  %v323_v54 = vld [vmem:[%s1860_s24 + $0x120] sm:$0xff]  ;;  %v1227_v56 = vpack.c.bf16 %v326_v49, %v322_v48  ;;  %v325_v57 = vld [vmem:[%s1860_s24 + $0x130] sm:$0xff]  ;;  %v328_v58 = vld [vmem:[%s1860_s24 + $0x148] sm:$0xff] }
  0x7c   : > { %1222 = vmatpush1.bf16.msra.mxu1 %v1221_v38  ;;  %1096 = vmatprep.subr.bf16.mxu0 %v1095_v39  ;;  %v332_v59 = vld [vmem:[%s1860_s24 + $0x168] sm:$0xff]  ;;  %v330_v60 = vld [vmem:[%s1860_s24 + $0x158] sm:$0xff]  ;;  %v1101_v62 = vpack.c.bf16 %v323_v54, %v319_v53  ;;  %v1229_v63 = vpack.c.bf16 %v325_v57, %v321_v55  ;;  %v327_v1 = vld [vmem:[%s1860_s24 + $0x140] sm:$0xff] }
  0x7d   : > { %1224 = vmatprep.subr.bf16.mxu1 %v1223_v43  ;;  %v334_v61 = vld [vmem:[%s1860_s24 + $0x178] sm:$0xff]  ;;  %v1103_v0 = vpack.c.bf16 %v332_v59, %v328_v58  ;;  %v331_v2 = vld [vmem:[%s1860_s24 + $0x160] sm:$0xff]  ;;  %v329_v3 = vld [vmem:[%s1860_s24 + $0x150] sm:$0xff] }
  0x7e   : > { %v1231_v4 = vpack.c.bf16 %v334_v61, %v330_v60  ;;  %v333_v5 = vld [vmem:[%s1860_s24 + $0x170] sm:$0xff]  ;;  %v336_v6 = vld [vmem:[%s1860_s24 + $0x188] sm:$0xff]  ;;  %v338_v8 = vld [vmem:[%s1860_s24 + $0x198] sm:$0xff]  ;;  %v1105_v10 = vpack.c.bf16 %v331_v2, %v327_v1 }
  0x7f   : > { %1098 = vmatpush1.bf16.msra.mxu0 %v1097_v50  ;;  %v340_v7 = vld [vmem:[%s1860_s24 + $0x1a8] sm:$0xff]  ;;  %v342_v9 = vld [vmem:[%s1860_s24 + $0x1b8] sm:$0xff]  ;;  %v1233_v11 = vpack.c.bf16 %v333_v5, %v329_v3  ;;  %v335_v13 = vld [vmem:[%s1860_s24 + $0x180] sm:$0xff] }
  0x80   : > { %1226 = vmatpush1.bf16.msra.mxu1 %v1225_v51  ;;  %1100 = vmatprep.subr.bf16.mxu0 %v1099_v52  ;;  %v1107_v12 = vpack.c.bf16 %v340_v7, %v336_v6  ;;  %v339_v14 = vld [vmem:[%s1860_s24 + $0x1a0] sm:$0xff]  ;;  %v337_v15 = vld [vmem:[%s1860_s24 + $0x190] sm:$0xff]  ;;  %v1235_v16 = vpack.c.bf16 %v342_v9, %v338_v8  ;;  %v344_v18 = vld [vmem:[%s1860_s24 + $0x1c8] sm:$0xff] }
  0x81   : > { %1228 = vmatprep.subr.bf16.mxu1 %v1227_v56  ;;  %v341_v17 = vld [vmem:[%s1860_s24 + $0x1b0] sm:$0xff]  ;;  %v348_v19 = vld [vmem:[%s1860_s24 + $0x1e8] sm:$0xff]  ;;  %v346_v20 = vld [vmem:[%s1860_s24 + $0x1d8] sm:$0xff]  ;;  %v1109_v22 = vpack.c.bf16 %v339_v14, %v335_v13 }
  0x82   : > { %v350_v21 = vld [vmem:[%s1860_s24 + $0x1f8] sm:$0xff]  ;;  %v1237_v23 = vpack.c.bf16 %v341_v17, %v337_v15  ;;  %v1111_v24 = vpack.c.bf16 %v348_v19, %v344_v18  ;;  %v343_v25 = vld [vmem:[%s1860_s24 + $0x1c0] sm:$0xff]  ;;  %v345_v27 = vld [vmem:[%s1860_s24 + $0x1d0] sm:$0xff] }
  0x83   : > { %1102 = vmatpush1.bf16.msra.mxu0 %v1101_v62  ;;  %v347_v26 = vld [vmem:[%s1860_s24 + $0x1e0] sm:$0xff]  ;;  %v1239_v28 = vpack.c.bf16 %v350_v21, %v346_v20  ;;  %v349_v29 = vld [vmem:[%s1860_s24 + $0x1f0] sm:$0xff]  ;;  %v352_v30 = vld [vmem:[%s1860_s24 + $0x208] sm:$0xff] }
  0x84   : > { %1230 = vmatpush1.bf16.msra.mxu1 %v1229_v63  ;;  %1104 = vmatprep.subr.bf16.mxu0 %v1103_v0  ;;  %v356_v31 = vld [vmem:[%s1860_s24 + $0x228] sm:$0xff]  ;;  %v354_v32 = vld [vmem:[%s1860_s24 + $0x218] sm:$0xff]  ;;  %v1113_v34 = vpack.c.bf16 %v347_v26, %v343_v25  ;;  %v1241_v35 = vpack.c.bf16 %v349_v29, %v345_v27  ;;  %v351_v37 = vld [vmem:[%s1860_s24 + $0x200] sm:$0xff] }
  0x85   : > { %1232 = vmatprep.subr.bf16.mxu1 %v1231_v4  ;;  %v358_v33 = vld [vmem:[%s1860_s24 + $0x238] sm:$0xff]  ;;  %v1115_v36 = vpack.c.bf16 %v356_v31, %v352_v30  ;;  %v355_v38 = vld [vmem:[%s1860_s24 + $0x220] sm:$0xff]  ;;  %v353_v39 = vld [vmem:[%s1860_s24 + $0x210] sm:$0xff] }
  0x86   : > { %v1243_v40 = vpack.c.bf16 %v358_v33, %v354_v32  ;;  %v357_v41 = vld [vmem:[%s1860_s24 + $0x230] sm:$0xff]  ;;  %v360_v42 = vld [vmem:[%s1860_s24 + $0x248] sm:$0xff]  ;;  %v362_v44 = vld [vmem:[%s1860_s24 + $0x258] sm:$0xff]  ;;  %v1117_v46 = vpack.c.bf16 %v355_v38, %v351_v37 }
  0x87   : > { %1106 = vmatpush1.bf16.msra.mxu0 %v1105_v10  ;;  %v364_v43 = vld [vmem:[%s1860_s24 + $0x268] sm:$0xff]  ;;  %v366_v45 = vld [vmem:[%s1860_s24 + $0x278] sm:$0xff]  ;;  %v1245_v47 = vpack.c.bf16 %v357_v41, %v353_v39  ;;  %v359_v49 = vld [vmem:[%s1860_s24 + $0x240] sm:$0xff] }
  0x88   : > { %1234 = vmatpush1.bf16.msra.mxu1 %v1233_v11  ;;  %1108 = vmatprep.subr.bf16.mxu0 %v1107_v12  ;;  %v1119_v48 = vpack.c.bf16 %v364_v43, %v360_v42  ;;  %v363_v50 = vld [vmem:[%s1860_s24 + $0x260] sm:$0xff]  ;;  %v361_v51 = vld [vmem:[%s1860_s24 + $0x250] sm:$0xff]  ;;  %v1247_v52 = vpack.c.bf16 %v366_v45, %v362_v44  ;;  %v368_v54 = vld [vmem:[%s1860_s24 + $0x288] sm:$0xff] }
  0x89   : > { %1236 = vmatprep.subr.bf16.mxu1 %v1235_v16  ;;  %v365_v53 = vld [vmem:[%s1860_s24 + $0x270] sm:$0xff]  ;;  %v372_v55 = vld [vmem:[%s1860_s24 + $0x2a8] sm:$0xff]  ;;  %v370_v56 = vld [vmem:[%s1860_s24 + $0x298] sm:$0xff]  ;;  %v1121_v58 = vpack.c.bf16 %v363_v50, %v359_v49 }
  0x8a   : > { %v374_v57 = vld [vmem:[%s1860_s24 + $0x2b8] sm:$0xff]  ;;  %v1249_v59 = vpack.c.bf16 %v365_v53, %v361_v51  ;;  %v1123_v60 = vpack.c.bf16 %v372_v55, %v368_v54  ;;  %v367_v61 = vld [vmem:[%s1860_s24 + $0x280] sm:$0xff]  ;;  %v369_v63 = vld [vmem:[%s1860_s24 + $0x290] sm:$0xff] }
  0x8b   : > { %1110 = vmatpush1.bf16.msra.mxu0 %v1109_v22  ;;  %v371_v62 = vld [vmem:[%s1860_s24 + $0x2a0] sm:$0xff]  ;;  %v1251_v0 = vpack.c.bf16 %v374_v57, %v370_v56  ;;  %v373_v1 = vld [vmem:[%s1860_s24 + $0x2b0] sm:$0xff]  ;;  %v376_v2 = vld [vmem:[%s1860_s24 + $0x2c8] sm:$0xff] }
  0x8c   : > { %1238 = vmatpush1.bf16.msra.mxu1 %v1237_v23  ;;  %1112 = vmatprep.subr.bf16.mxu0 %v1111_v24  ;;  %v380_v3 = vld [vmem:[%s1860_s24 + $0x2e8] sm:$0xff]  ;;  %v378_v4 = vld [vmem:[%s1860_s24 + $0x2d8] sm:$0xff]  ;;  %v1125_v6 = vpack.c.bf16 %v371_v62, %v367_v61  ;;  %v375_v7 = vld [vmem:[%s1860_s24 + $0x2c0] sm:$0xff]  ;;  %v1253_v8 = vpack.c.bf16 %v373_v1, %v369_v63 }
  0x8d   : > { %1240 = vmatprep.subr.bf16.mxu1 %v1239_v28  ;;  %v382_v5 = vld [vmem:[%s1860_s24 + $0x2f8] sm:$0xff]  ;;  %v1127_v9 = vpack.c.bf16 %v380_v3, %v376_v2  ;;  %v379_v10 = vld [vmem:[%s1860_s24 + $0x2e0] sm:$0xff]  ;;  %v377_v11 = vld [vmem:[%s1860_s24 + $0x2d0] sm:$0xff] }
  0x8e   : > { %v381_v12 = vld [vmem:[%s1860_s24 + $0x2f0] sm:$0xff]  ;;  %v1255_v13 = vpack.c.bf16 %v382_v5, %v378_v4  ;;  %v384_v14 = vld [vmem:[%s1860_s24 + $0x308] sm:$0xff]  ;;  %v386_v17 = vld [vmem:[%s1860_s24 + $0x318] sm:$0xff]  ;;  %v1129_v19 = vpack.c.bf16 %v379_v10, %v375_v7 }
  0x8f   : > { %1114 = vmatpush1.bf16.msra.mxu0 %v1113_v34  ;;  %v388_v15 = vld [vmem:[%s1860_s24 + $0x328] sm:$0xff]  ;;  %v390_v18 = vld [vmem:[%s1860_s24 + $0x338] sm:$0xff]  ;;  %v1257_v20 = vpack.c.bf16 %v381_v12, %v377_v11  ;;  %v383_v22 = vld [vmem:[%s1860_s24 + $0x300] sm:$0xff] }
  0x90   : > { %1242 = vmatpush1.bf16.msra.mxu1 %v1241_v35  ;;  %1116 = vmatprep.subr.bf16.mxu0 %v1115_v36  ;;  %v280_v16 = vld [vmem:[#allocation2 + $0x8] sm:$0xff]  ;;  %v1131_v21 = vpack.c.bf16 %v388_v15, %v384_v14  ;;  %v387_v23 = vld [vmem:[%s1860_s24 + $0x320] sm:$0xff]  ;;  %v385_v24 = vld [vmem:[%s1860_s24 + $0x310] sm:$0xff]  ;;  %v1259_v25 = vpack.c.bf16 %v390_v18, %v386_v17 }
  0x91   : > { %1244 = vmatprep.subr.bf16.mxu1 %v1243_v40  ;;  %629 = vmatprep.mubr.f32.mxu0 %v280_v16  ;;  %v389_v26 = vld [vmem:[%s1860_s24 + $0x330] sm:$0xff]  ;;  %v392_v27 = vld [vmem:[%s1860_s24 + $0x348] sm:$0xff]  ;;  %v394_v29 = vld [vmem:[%s1860_s24 + $0x358] sm:$0xff]  ;;  %v1133_v31 = vpack.c.bf16 %v387_v23, %v383_v22 }
  0x92   : > { %783 = vmatprep.mubr.f32.mxu1 %v280_v16  ;;  %v396_v28 = vld [vmem:[%s1860_s24 + $0x368] sm:$0xff]  ;;  %v398_v30 = vld [vmem:[%s1860_s24 + $0x378] sm:$0xff]  ;;  %v1261_v32 = vpack.c.bf16 %v389_v26, %v385_v24  ;;  %v391_v34 = vld [vmem:[%s1860_s24 + $0x340] sm:$0xff] }
  0x93   : > { %1118 = vmatpush1.bf16.msra.mxu0 %v1117_v46  ;;  %v1135_v33 = vpack.c.bf16 %v396_v28, %v392_v27  ;;  %v395_v35 = vld [vmem:[%s1860_s24 + $0x360] sm:$0xff]  ;;  %v393_v36 = vld [vmem:[%s1860_s24 + $0x350] sm:$0xff]  ;;  %v1263_v37 = vpack.c.bf16 %v398_v30, %v394_v29  ;;  %v400_v39 = vld [vmem:[%s1860_s24 + $0x388] sm:$0xff] }
  0x94   : > { %1246 = vmatpush1.bf16.msra.mxu1 %v1245_v47  ;;  %1120 = vmatprep.subr.bf16.mxu0 %v1119_v48  ;;  %v397_v38 = vld [vmem:[%s1860_s24 + $0x370] sm:$0xff]  ;;  %v404_v40 = vld [vmem:[%s1860_s24 + $0x3a8] sm:$0xff]  ;;  %v402_v41 = vld [vmem:[%s1860_s24 + $0x398] sm:$0xff]  ;;  %v1137_v43 = vpack.c.bf16 %v395_v35, %v391_v34 }
  0x95   : > { %1248 = vmatprep.subr.bf16.mxu1 %v1247_v52  ;;  %v406_v42 = vld [vmem:[%s1860_s24 + $0x3b8] sm:$0xff]  ;;  %v1265_v44 = vpack.c.bf16 %v397_v38, %v393_v36  ;;  %v1139_v45 = vpack.c.bf16 %v404_v40, %v400_v39  ;;  %v399_v46 = vld [vmem:[%s1860_s24 + $0x380] sm:$0xff]  ;;  %v401_v48 = vld [vmem:[%s1860_s24 + $0x390] sm:$0xff] }
  0x96   : > { %v403_v47 = vld [vmem:[%s1860_s24 + $0x3a0] sm:$0xff]  ;;  %v1267_v49 = vpack.c.bf16 %v406_v42, %v402_v41  ;;  %v405_v50 = vld [vmem:[%s1860_s24 + $0x3b0] sm:$0xff]  ;;  %v408_v51 = vld [vmem:[%s1860_s24 + $0x3c8] sm:$0xff] }
  0x97   : > { %1122 = vmatpush1.bf16.msra.mxu0 %v1121_v58  ;;  %v412_v52 = vld [vmem:[%s1860_s24 + $0x3e8] sm:$0xff]  ;;  %v410_v53 = vld [vmem:[%s1860_s24 + $0x3d8] sm:$0xff]  ;;  %v1141_v55 = vpack.c.bf16 %v403_v47, %v399_v46  ;;  %v1269_v56 = vpack.c.bf16 %v405_v50, %v401_v48  ;;  %v407_v58 = vld [vmem:[%s1860_s24 + $0x3c0] sm:$0xff] }
  0x98   : > { %1250 = vmatpush1.bf16.msra.mxu1 %v1249_v59  ;;  %1124 = vmatprep.subr.bf16.mxu0 %v1123_v60  ;;  %v414_v54 = vld [vmem:[%s1860_s24 + $0x3f8] sm:$0xff]  ;;  %v1143_v57 = vpack.c.bf16 %v412_v52, %v408_v51  ;;  %v411_v59 = vld [vmem:[%s1860_s24 + $0x3e0] sm:$0xff]  ;;  %v409_v60 = vld [vmem:[%s1860_s24 + $0x3d0] sm:$0xff] }
  0x99   : > { %1252 = vmatprep.subr.bf16.mxu1 %v1251_v0  ;;  %v1271_v61 = vpack.c.bf16 %v414_v54, %v410_v53  ;;  %v413_v62 = vld [vmem:[%s1860_s24 + $0x3f0] sm:$0xff]  ;;  %v416_v63 = vld [vmem:[%s1860_s24 + $0x408] sm:$0xff]  ;;  %v418_v1 = vld [vmem:[%s1860_s24 + $0x418] sm:$0xff]  ;;  %v1145_v3 = vpack.c.bf16 %v411_v59, %v407_v58 }
  0x9a   : > { %v420_v0 = vld [vmem:[%s1860_s24 + $0x428] sm:$0xff]  ;;  %v422_v2 = vld [vmem:[%s1860_s24 + $0x438] sm:$0xff]  ;;  %v1273_v4 = vpack.c.bf16 %v413_v62, %v409_v60  ;;  %v419_v7 = vld [vmem:[%s1860_s24 + $0x420] sm:$0xff] }
  0x9b   : > { %1126 = vmatpush1.bf16.msra.mxu0 %v1125_v6  ;;  %v1147_v5 = vpack.c.bf16 %v420_v0, %v416_v63  ;;  %v415_v6 = vld [vmem:[%s1860_s24 + $0x400] sm:$0xff]  ;;  %v421_v10 = vld [vmem:[%s1860_s24 + $0x430] sm:$0xff]  ;;  %v424_v11 = vld [vmem:[%s1860_s24 + $0x448] sm:$0xff] }
  0x9c   : > { %1254 = vmatpush1.bf16.msra.mxu1 %v1253_v8  ;;  %1128 = vmatprep.subr.bf16.mxu0 %v1127_v9  ;;  %v417_v8 = vld [vmem:[%s1860_s24 + $0x410] sm:$0xff]  ;;  %v1275_v9 = vpack.c.bf16 %v422_v2, %v418_v1  ;;  %v428_v12 = vld [vmem:[%s1860_s24 + $0x468] sm:$0xff]  ;;  %v430_v14 = vld [vmem:[%s1860_s24 + $0x478] sm:$0xff]  ;;  %v1149_v16 = vpack.c.bf16 %v419_v7, %v415_v6 }
  0x9d   : > { %1256 = vmatprep.subr.bf16.mxu1 %v1255_v13  ;;  %v426_v13 = vld [vmem:[%s1860_s24 + $0x458] sm:$0xff]  ;;  %v279_v15 = vld [vmem:[#allocation2] sm:$0xff]  ;;  %v1277_v17 = vpack.c.bf16 %v421_v10, %v417_v8  ;;  %v1151_v18 = vpack.c.bf16 %v428_v12, %v424_v11  ;;  %v429_v23 = vld [vmem:[%s1860_s24 + $0x470] sm:$0xff] }
  0x9e   : > { %v1279_v22 = vpack.c.bf16 %v430_v14, %v426_v13  ;;  %v432_v24 = vld [vmem:[%s1860_s24 + $0x488] sm:$0xff]  ;;  %v434_v26 = vld [vmem:[%s1860_s24 + $0x498] sm:$0xff]  ;;  %v437_v35 = vld [vmem:[%s1860_s24 + $0x4b0] sm:$0xff] }
  0x9f   : > { %1130 = vmatpush1.bf16.msra.mxu0 %v1129_v19  ;;  %v423_v19 = vld [vmem:[%s1860_s24 + $0x440] sm:$0xff]  ;;  %v438_v27 = vld [vmem:[%s1860_s24 + $0x4b8] sm:$0xff]  ;;  %v440_v36 = vld [vmem:[%s1860_s24 + $0x4c8] sm:$0xff] }
  0xa0   : > { %1258 = vmatpush1.bf16.msra.mxu1 %v1257_v20  ;;  %1132 = vmatprep.subr.bf16.mxu0 %v1131_v21  ;;  %v427_v20 = vld [vmem:[%s1860_s24 + $0x460] sm:$0xff]  ;;  %v425_v21 = vld [vmem:[%s1860_s24 + $0x450] sm:$0xff]  ;;  %v1283_v34 = vpack.c.bf16 %v438_v27, %v434_v26  ;;  %v442_v38 = vld [vmem:[%s1860_s24 + $0x4d8] sm:$0xff] }
  0xa1   : > { %1260 = vmatprep.subr.bf16.mxu1 %v1259_v25  ;;  %v436_v25 = vld [vmem:[%s1860_s24 + $0x4a8] sm:$0xff]  ;;  %v1153_v28 = vpack.c.bf16 %v427_v20, %v423_v19  ;;  %v1281_v29 = vpack.c.bf16 %v429_v23, %v425_v21  ;;  %v446_v39 = vld [vmem:[%s1860_s24 + $0x4f8] sm:$0xff]  ;;  %v445_v47 = vld [vmem:[%s1860_s24 + $0x4f0] sm:$0xff] }
  0xa2   : > { %v1155_v30 = vpack.c.bf16 %v436_v25, %v432_v24  ;;  %v1287_v46 = vpack.c.bf16 %v446_v39, %v442_v38  ;;  %v448_v48 = vld [vmem:[%s1860_s24 + $0x508] sm:$0xff]  ;;  %v450_v50 = vld [vmem:[%s1860_s24 + $0x518] sm:$0xff]  ;;  %v453_v59 = vld [vmem:[%s1860_s24 + $0x530] sm:$0xff] }
  0xa3   : > { %1134 = vmatpush1.bf16.msra.mxu0 %v1133_v31  ;;  %v431_v31 = vld [vmem:[%s1860_s24 + $0x480] sm:$0xff]  ;;  %v454_v51 = vld [vmem:[%s1860_s24 + $0x538] sm:$0xff]  ;;  %v456_v60 = vld [vmem:[%s1860_s24 + $0x548] sm:$0xff] }
  0xa4   : > { %1262 = vmatpush1.bf16.msra.mxu1 %v1261_v32  ;;  %1136 = vmatprep.subr.bf16.mxu0 %v1135_v33  ;;  %v435_v32 = vld [vmem:[%s1860_s24 + $0x4a0] sm:$0xff]  ;;  %v433_v33 = vld [vmem:[%s1860_s24 + $0x490] sm:$0xff]  ;;  %v1291_v58 = vpack.c.bf16 %v454_v51, %v450_v50  ;;  %v458_v62 = vld [vmem:[%s1860_s24 + $0x558] sm:$0xff] }
  0xa5   : > { %1264 = vmatprep.subr.bf16.mxu1 %v1263_v37  ;;  %v444_v37 = vld [vmem:[%s1860_s24 + $0x4e8] sm:$0xff]  ;;  %v1157_v40 = vpack.c.bf16 %v435_v32, %v431_v31  ;;  %v1285_v41 = vpack.c.bf16 %v437_v35, %v433_v33  ;;  %v462_v63 = vld [vmem:[%s1860_s24 + $0x578] sm:$0xff]  ;;  %v461_v7 = vld [vmem:[%s1860_s24 + $0x570] sm:$0xff] }
  0xa6   : > { %v1159_v42 = vpack.c.bf16 %v444_v37, %v440_v36  ;;  %v1295_v6 = vpack.c.bf16 %v462_v63, %v458_v62  ;;  %v464_v8 = vld [vmem:[%s1860_s24 + $0x588] sm:$0xff]  ;;  %v466_v10 = vld [vmem:[%s1860_s24 + $0x598] sm:$0xff]  ;;  %v463_v14 = vld [vmem:[%s1860_s24 + $0x580] sm:$0xff] }
  0xa7   : > { %1138 = vmatpush1.bf16.msra.mxu0 %v1137_v43  ;;  %v439_v43 = vld [vmem:[%s1860_s24 + $0x4c0] sm:$0xff]  ;;  %v470_v11 = vld [vmem:[%s1860_s24 + $0x5b8] sm:$0xff]  ;;  %v284_v12 = vld [vmem:[#allocation2 + $0x28] sm:$0xff] }
  0xa8   : > { %1266 = vmatpush1.bf16.msra.mxu1 %v1265_v44  ;;  %1140 = vmatprep.subr.bf16.mxu0 %v1139_v45  ;;  %v443_v44 = vld [vmem:[%s1860_s24 + $0x4e0] sm:$0xff]  ;;  %v441_v45 = vld [vmem:[%s1860_s24 + $0x4d0] sm:$0xff]  ;;  %v1299_v21 = vpack.c.bf16 %v470_v11, %v466_v10  ;;  %v476_v23 = vld [vmem:[%s1860_s24 + $0x5e8] sm:$0xff] }
  0xa9   : > { %1268 = vmatprep.subr.bf16.mxu1 %v1267_v49  ;;  %v452_v49 = vld [vmem:[%s1860_s24 + $0x528] sm:$0xff]  ;;  %v1161_v52 = vpack.c.bf16 %v443_v44, %v439_v43  ;;  %v1289_v53 = vpack.c.bf16 %v445_v47, %v441_v45  ;;  %v465_v19 = vld [vmem:[%s1860_s24 + $0x590] sm:$0xff]  ;;  %v282_v24 = vld [vmem:[#allocation2 + $0x18] sm:$0xff] }
  0xaa   : > { %v1163_v54 = vpack.c.bf16 %v452_v49, %v448_v48  ;;  %v469_v20 = vld [vmem:[%s1860_s24 + $0x5b0] sm:$0xff]  ;;  %v474_v25 = vld [vmem:[%s1860_s24 + $0x5d8] sm:$0xff]  ;;  %v475_v31 = vld [vmem:[%s1860_s24 + $0x5e0] sm:$0xff] }
  0xab   : > { %1142 = vmatpush1.bf16.msra.mxu0 %v1141_v55  ;;  %v447_v55 = vld [vmem:[%s1860_s24 + $0x500] sm:$0xff]  ;;  %v478_v26 = vld [vmem:[%s1860_s24 + $0x5f8] sm:$0xff]  ;;  %v473_v32 = vld [vmem:[%s1860_s24 + $0x5d0] sm:$0xff] }
  0xac   : > { %1270 = vmatpush1.bf16.msra.mxu1 %v1269_v56  ;;  %1144 = vmatprep.subr.bf16.mxu0 %v1143_v57  ;;  %v451_v56 = vld [vmem:[%s1860_s24 + $0x520] sm:$0xff]  ;;  %v449_v57 = vld [vmem:[%s1860_s24 + $0x510] sm:$0xff]  ;;  %v1303_v33 = vpack.c.bf16 %v478_v26, %v474_v25  ;;  %v480_v35 = vld [vmem:[%s1860_s24 + $0x608] sm:$0xff] }
  0xad   : > { %1272 = vmatprep.subr.bf16.mxu1 %v1271_v61  ;;  %v460_v61 = vld [vmem:[%s1860_s24 + $0x568] sm:$0xff]  ;;  %v1165_v0 = vpack.c.bf16 %v451_v56, %v447_v55  ;;  %v1293_v1 = vpack.c.bf16 %v453_v59, %v449_v57  ;;  %v482_v37 = vld [vmem:[%s1860_s24 + $0x618] sm:$0xff]  ;;  %v483_v43 = vld [vmem:[%s1860_s24 + $0x620] sm:$0xff] }
  0xae   : > { %v1167_v2 = vpack.c.bf16 %v460_v61, %v456_v60  ;;  %v484_v36 = vld [vmem:[%s1860_s24 + $0x628] sm:$0xff]  ;;  %v486_v38 = vld [vmem:[%s1860_s24 + $0x638] sm:$0xff]  ;;  %v481_v44 = vld [vmem:[%s1860_s24 + $0x610] sm:$0xff] }
  0xaf   : > { %1146 = vmatpush1.bf16.msra.mxu0 %v1145_v3  ;;  %v455_v3 = vld [vmem:[%s1860_s24 + $0x540] sm:$0xff]  ;;  %v1307_v45 = vpack.c.bf16 %v486_v38, %v482_v37  ;;  %v488_v47 = vld [vmem:[%s1860_s24 + $0x648] sm:$0xff]  ;;  %v490_v49 = vld [vmem:[%s1860_s24 + $0x658] sm:$0xff] }
  0xb0   : > { %1274 = vmatpush1.bf16.msra.mxu1 %v1273_v4  ;;  %1148 = vmatprep.subr.bf16.mxu0 %v1147_v5  ;;  %v459_v4 = vld [vmem:[%s1860_s24 + $0x560] sm:$0xff]  ;;  %v457_v5 = vld [vmem:[%s1860_s24 + $0x550] sm:$0xff]  ;;  %v492_v48 = vld [vmem:[%s1860_s24 + $0x668] sm:$0xff] }
  0xb1   : > { %1276 = vmatprep.subr.bf16.mxu1 %v1275_v9  ;;  %v468_v9 = vld [vmem:[%s1860_s24 + $0x5a8] sm:$0xff]  ;;  %v1169_v13 = vpack.c.bf16 %v459_v4, %v455_v3  ;;  %v494_v50 = vld [vmem:[%s1860_s24 + $0x678] sm:$0xff]  ;;  %v491_v55 = vld [vmem:[%s1860_s24 + $0x660] sm:$0xff] }
  0xb2   : > { %630 = vmatmul.mubr.f32.vlgmr.msra.gmra.mrb[0].mxu0 %v279_v15  ;;  %v489_v56 = vld [vmem:[%s1860_s24 + $0x650] sm:$0xff]  ;;  %v1311_v57 = vpack.c.bf16 %v494_v50, %v490_v49  ;;  %v496_v59 = vld [vmem:[%s1860_s24 + $0x688] sm:$0xff]  ;;  %v498_v61 = vld [vmem:[%s1860_s24 + $0x698] sm:$0xff] }
  0xb3   : > { %1150 = vmatpush1.bf16.msra.mxu0 %v1149_v16  ;;  %784 = vmatmul.mubr.f32.vlgmr.msra.gmra.mrb[0].mxu1 %v279_v15  ;;  %v283_v15 = vld [vmem:[#allocation2 + $0x20] sm:$0xff]  ;;  %v1297_v16 = vpack.c.bf16 %v461_v7, %v457_v5  ;;  %v500_v60 = vld [vmem:[%s1860_s24 + $0x6a8] sm:$0xff]  ;;  %v502_v62 = vld [vmem:[%s1860_s24 + $0x6b8] sm:$0xff] }
  0xb4   : > { %1278 = vmatpush1.bf16.msra.mxu1 %v1277_v17  ;;  %1152 = vmatprep.subr.bf16.mxu0 %v1151_v18  ;;  %v1171_v17 = vpack.c.bf16 %v468_v9, %v464_v8  ;;  %v467_v18 = vld [vmem:[%s1860_s24 + $0x5a0] sm:$0xff]  ;;  %v497_v4 = vld [vmem:[%s1860_s24 + $0x690] sm:$0xff]  ;;  %v1315_v5 = vpack.c.bf16 %v502_v62, %v498_v61  ;;  %v504_v7 = vld [vmem:[%s1860_s24 + $0x6c8] sm:$0xff] }
  0xb5   : > { %1280 = vmatprep.subr.bf16.mxu1 %v1279_v22  ;;  %635 = vmatprep.mubr.f32.mxu0 %v284_v12  ;;  %v472_v22 = vld [vmem:[%s1860_s24 + $0x5c8] sm:$0xff]  ;;  %v1173_v27 = vpack.c.bf16 %v467_v18, %v463_v14  ;;  %v499_v3 = vld [vmem:[%s1860_s24 + $0x6a0] sm:$0xff]  ;;  %v506_v9 = vld [vmem:[%s1860_s24 + $0x6d8] sm:$0xff] }
  0xb6   : > { %789 = vmatprep.mubr.f32.mxu1 %v284_v12  ;;  %636 = vmatmul.mubr.f32.gmra.mrb[2].mxu0 %v283_v15  ;;  %v508_v8 = vld [vmem:[%s1860_s24 + $0x6e8] sm:$0xff]  ;;  %v510_v10 = vld [vmem:[%s1860_s24 + $0x6f8] sm:$0xff]  ;;  %v503_v14 = vld [vmem:[%s1860_s24 + $0x6c0] sm:$0xff] }
  0xb7   : > { %1154 = vmatpush1.bf16.msra.mxu0 %v1153_v28  ;;  %790 = vmatmul.mubr.f32.gmra.mrb[2].mxu1 %v283_v15  ;;  %v1301_v28 = vpack.c.bf16 %v469_v20, %v465_v19  ;;  %v507_v15 = vld [vmem:[%s1860_s24 + $0x6e0] sm:$0xff]  ;;  %v509_v18 = vld [vmem:[%s1860_s24 + $0x6f0] sm:$0xff]  ;;  %v512_v19 = vld [vmem:[%s1860_s24 + $0x708] sm:$0xff] }
  0xb8   : > { %1282 = vmatpush1.bf16.msra.mxu1 %v1281_v29  ;;  %1156 = vmatprep.subr.bf16.mxu0 %v1155_v30  ;;  %v1175_v29 = vpack.c.bf16 %v476_v23, %v472_v22  ;;  %v471_v30 = vld [vmem:[%s1860_s24 + $0x5c0] sm:$0xff]  ;;  %v516_v20 = vld [vmem:[%s1860_s24 + $0x728] sm:$0xff]  ;;  %v518_v22 = vld [vmem:[%s1860_s24 + $0x738] sm:$0xff]  ;;  %v1193_v23 = vpack.c.bf16 %v507_v15, %v503_v14 }
  0xb9   : > { %1284 = vmatprep.subr.bf16.mxu1 %v1283_v34  ;;  %706 = vmatprep.mubr.f32.mxu0 %v282_v24  ;;  %v477_v34 = vld [vmem:[%s1860_s24 + $0x5f0] sm:$0xff]  ;;  %v1177_v39 = vpack.c.bf16 %v475_v31, %v471_v30  ;;  %v1195_v25 = vpack.c.bf16 %v516_v20, %v512_v19  ;;  %v511_v26 = vld [vmem:[%s1860_s24 + $0x700] sm:$0xff]  ;;  %v520_v31 = vld [vmem:[%s1860_s24 + $0x748] sm:$0xff] }
  0xba   : > { %860 = vmatprep.mubr.f32.mxu1 %v282_v24  ;;  %v517_v30 = vld [vmem:[%s1860_s24 + $0x730] sm:$0xff]  ;;  %v519_v38 = vld [vmem:[%s1860_s24 + $0x740] sm:$0xff] }
  0xbb   : > { %1158 = vmatpush1.bf16.msra.mxu0 %v1157_v40  ;;  %v1305_v40 = vpack.c.bf16 %v477_v34, %v473_v32  ;;  %v524_v32 = vld [vmem:[%s1860_s24 + $0x768] sm:$0xff]  ;;  %v526_v34 = vld [vmem:[%s1860_s24 + $0x778] sm:$0xff]  ;;  %v527_v50 = vld [vmem:[%s1860_s24 + $0x780] sm:$0xff] }
  0xbc   : > { %1286 = vmatpush1.bf16.msra.mxu1 %v1285_v41  ;;  %1160 = vmatprep.subr.bf16.mxu0 %v1159_v42  ;;  %v1179_v41 = vpack.c.bf16 %v484_v36, %v480_v35  ;;  %v479_v42 = vld [vmem:[%s1860_s24 + $0x600] sm:$0xff]  ;;  %v1199_v37 = vpack.c.bf16 %v524_v32, %v520_v31 }
  0xbd   : > { %1288 = vmatprep.subr.bf16.mxu1 %v1287_v46  ;;  %v485_v46 = vld [vmem:[%s1860_s24 + $0x630] sm:$0xff]  ;;  %v1181_v51 = vpack.c.bf16 %v483_v43, %v479_v42  ;;  %v528_v43 = vld [vmem:[%s1860_s24 + $0x788] sm:$0xff]  ;;  %v535_v62 = vld [vmem:[%s1860_s24 + $0x7c0] sm:$0xff] }
  0xbe   : > { %v525_v42 = vld [vmem:[%s1860_s24 + $0x770] sm:$0xff] }
  0xbf   : > { %1162 = vmatpush1.bf16.msra.mxu0 %v1161_v52  ;;  %v1309_v52 = vpack.c.bf16 %v485_v46, %v481_v44  ;;  %v532_v44 = vld [vmem:[%s1860_s24 + $0x7a8] sm:$0xff]  ;;  %v534_v46 = vld [vmem:[%s1860_s24 + $0x7b8] sm:$0xff] }
  0xc0   : > { %1290 = vmatpush1.bf16.msra.mxu1 %v1289_v53  ;;  %1164 = vmatprep.subr.bf16.mxu0 %v1163_v54  ;;  %v1183_v53 = vpack.c.bf16 %v492_v48, %v488_v47  ;;  %v487_v54 = vld [vmem:[%s1860_s24 + $0x640] sm:$0xff]  ;;  %v1203_v49 = vpack.c.bf16 %v532_v44, %v528_v43 }
  0xc1   : > { %1292 = vmatprep.subr.bf16.mxu1 %v1291_v58  ;;  %v493_v58 = vld [vmem:[%s1860_s24 + $0x670] sm:$0xff]  ;;  %v1185_v63 = vpack.c.bf16 %v491_v55, %v487_v54  ;;  %v536_v55 = vld [vmem:[%s1860_s24 + $0x7c8] sm:$0xff] }
  0xc2   : > { %v533_v54 = vld [vmem:[%s1860_s24 + $0x7b0] sm:$0xff] }
  0xc3   : > { %1166 = vmatpush1.bf16.msra.mxu0 %v1165_v0  ;;  %v1313_v0 = vpack.c.bf16 %v493_v58, %v489_v56  ;;  %v540_v56 = vld [vmem:[%s1860_s24 + $0x7e8] sm:$0xff]  ;;  %v542_v58 = vld [vmem:[%s1860_s24 + $0x7f8] sm:$0xff] }
  0xc4   : > { %1294 = vmatpush1.bf16.msra.mxu1 %v1293_v1  ;;  %1168 = vmatprep.subr.bf16.mxu0 %v1167_v2  ;;  %v1187_v1 = vpack.c.bf16 %v500_v60, %v496_v59  ;;  %v495_v2 = vld [vmem:[%s1860_s24 + $0x680] sm:$0xff]  ;;  %v1207_v61 = vpack.c.bf16 %v540_v56, %v536_v55 }
  0xc5   : > { %1296 = vmatprep.subr.bf16.mxu1 %v1295_v6  ;;  %v501_v6 = vld [vmem:[%s1860_s24 + $0x6b0] sm:$0xff]  ;;  %v1189_v11 = vpack.c.bf16 %v499_v3, %v495_v2 }
  0xc6   : > { %v1317_v12 = vpack.c.bf16 %v501_v6, %v497_v4  ;;  %v541_v2 = vld [vmem:[%s1860_s24 + $0x7f0] sm:$0xff]  ;;  %v286_v6 = vld [vmem:[#allocation2 + $0x38] sm:$0xff] }
  0xc7   : > { %1170 = vmatpush1.bf16.msra.mxu0 %v1169_v13  ;;  %v1191_v13 = vpack.c.bf16 %v508_v8, %v504_v7  ;;  %v285_v7 = vld [vmem:[#allocation2 + $0x30] sm:$0xff]  ;;  %v545_v8 = vlaneseq }
  0xc8   : > { %1298 = vmatpush1.bf16.msra.mxu1 %v1297_v16  ;;  %1172 = vmatprep.subr.bf16.mxu0 %v1171_v17  ;;  %v505_v16 = vld [vmem:[%s1860_s24 + $0x6d0] sm:$0xff]  ;;  %v1319_v17 = vpack.c.bf16 %v510_v10, %v506_v9 }
  0xc9   : > { %1300 = vmatprep.subr.bf16.mxu1 %v1299_v21  ;;  %v514_v21 = vld [vmem:[%s1860_s24 + $0x718] sm:$0xff]  ;;  %v1321_v24 = vpack.c.bf16 %v509_v18, %v505_v16  ;;  %v546_v9 = vshrl.u32 %v545_v8, 7 }
  0xcb   : > { %1174 = vmatpush1.bf16.msra.mxu0 %v1173_v27  ;;  %v515_v27 = vld [vmem:[%s1860_s24 + $0x720] sm:$0xff]  ;;  %v547_v10 = vsub.s32 0, %v546_v9  ;;  %v559_v14 = vsub.s32 3, %v546_v9 }
  0xcc   : > { %1302 = vmatpush1.bf16.msra.mxu1 %v1301_v28  ;;  %1176 = vmatprep.subr.bf16.mxu0 %v1175_v29  ;;  %v513_v28 = vld [vmem:[%s1860_s24 + $0x710] sm:$0xff]  ;;  %v1323_v29 = vpack.c.bf16 %v518_v22, %v514_v21  ;;  %v1197_v35 = vpack.c.bf16 %v515_v27, %v511_v26 }
  0xcd   : > { %1304 = vmatprep.subr.bf16.mxu1 %v1303_v33  ;;  %v522_v33 = vld [vmem:[%s1860_s24 + $0x758] sm:$0xff]  ;;  %v1325_v36 = vpack.c.bf16 %v517_v30, %v513_v28 }
  0xcf   : > { %1178 = vmatpush1.bf16.msra.mxu0 %v1177_v39  ;;  %v523_v39 = vld [vmem:[%s1860_s24 + $0x760] sm:$0xff] }
  0xd0   : > { %1306 = vmatpush1.bf16.msra.mxu1 %v1305_v40  ;;  %1180 = vmatprep.subr.bf16.mxu0 %v1179_v41  ;;  %v521_v40 = vld [vmem:[%s1860_s24 + $0x750] sm:$0xff]  ;;  %v1327_v41 = vpack.c.bf16 %v526_v34, %v522_v33  ;;  %v1201_v47 = vpack.c.bf16 %v523_v39, %v519_v38 }
  0xd1   : > { %1308 = vmatprep.subr.bf16.mxu1 %v1307_v45  ;;  %v530_v45 = vld [vmem:[%s1860_s24 + $0x798] sm:$0xff]  ;;  %v1329_v48 = vpack.c.bf16 %v525_v42, %v521_v40 }
  0xd3   : > { %1182 = vmatpush1.bf16.msra.mxu0 %v1181_v51  ;;  %v531_v51 = vld [vmem:[%s1860_s24 + $0x7a0] sm:$0xff] }
  0xd4   : > { %1310 = vmatpush1.bf16.msra.mxu1 %v1309_v52  ;;  %1184 = vmatprep.subr.bf16.mxu0 %v1183_v53  ;;  %v529_v52 = vld [vmem:[%s1860_s24 + $0x790] sm:$0xff]  ;;  %v1331_v53 = vpack.c.bf16 %v534_v46, %v530_v45  ;;  %v1205_v59 = vpack.c.bf16 %v531_v51, %v527_v50 }
  0xd5   : > { %1312 = vmatprep.subr.bf16.mxu1 %v1311_v57  ;;  %v538_v57 = vld [vmem:[%s1860_s24 + $0x7d8] sm:$0xff]  ;;  %v1333_v60 = vpack.c.bf16 %v533_v54, %v529_v52 }
  0xd7   : > { %1186 = vmatpush1.bf16.msra.mxu0 %v1185_v63  ;;  %v539_v63 = vld [vmem:[%s1860_s24 + $0x7e0] sm:$0xff] }
  0xd8   : > { %1314 = vmatpush1.bf16.msra.mxu1 %v1313_v0  ;;  %1188 = vmatprep.subr.bf16.mxu0 %v1187_v1  ;;  %v1335_v0 = vpack.c.bf16 %v542_v58, %v538_v57  ;;  %v537_v1 = vld [vmem:[%s1860_s24 + $0x7d0] sm:$0xff]  ;;  %v1209_v3 = vpack.c.bf16 %v539_v63, %v535_v62 }
  0xd9   : > { %1316 = vmatprep.subr.bf16.mxu1 %v1315_v5  ;;  %v1337_v4 = vpack.c.bf16 %v541_v2, %v537_v1  ;;  %v281_v5 = vld [vmem:[#allocation2 + $0x10] sm:$0xff] }
  0xdb   : > { %1190 = vmatpush1.bf16.msra.mxu0 %v1189_v11  ;;  %v543_v11 = vld [vmem:[%s250_s12] sm:$0xf] }
  0xdc   : > { %1318 = vmatpush1.bf16.msra.mxu1 %v1317_v12  ;;  %1192 = vmatprep.subr.bf16.mxu0 %v1191_v13  ;;  %v555_v12 = vsub.s32 2, %v546_v9  ;;  %v551_v13 = vsub.s32 1, %v546_v9  ;;  %v548_v15 = vrot.slane %v543_v11, %v547_v10  ;;  %v560_v18 = vrot.slane %v543_v11, %v559_v14 }
  0xdd   : > { %1320 = vmatprep.subr.bf16.mxu1 %v1319_v17 }
  0xde   : > { %v556_v16 = vrot.slane %v543_v11, %v555_v12  ;;  %v552_v17 = vrot.slane %v543_v11, %v551_v13 }
  0xdf   : > { %1194 = vmatpush1.bf16.msra.mxu0 %v1193_v23 }
  0xe0   : > { %1322 = vmatpush1.bf16.msra.mxu1 %v1321_v24  ;;  %1196 = vmatprep.subr.bf16.mxu0 %v1195_v25 }
  0xe1   : > { %1324 = vmatprep.subr.bf16.mxu1 %v1323_v29 }
  0xe3   : > { %1198 = vmatpush1.bf16.msra.mxu0 %v1197_v35 }
  0xe4   : > { %1326 = vmatpush1.bf16.msra.mxu1 %v1325_v36  ;;  %1200 = vmatprep.subr.bf16.mxu0 %v1199_v37 }
  0xe5   : > { %1328 = vmatprep.subr.bf16.mxu1 %v1327_v41 }
  0xe7   : > { %1202 = vmatpush1.bf16.msra.mxu0 %v1201_v47 }
  0xe8   : > { %1330 = vmatpush1.bf16.msra.mxu1 %v1329_v48  ;;  %1204 = vmatprep.subr.bf16.mxu0 %v1203_v49 }
  0xe9   : > { %1332 = vmatprep.subr.bf16.mxu1 %v1331_v53 }
  0xeb   : > { %1206 = vmatpush1.bf16.msra.mxu0 %v1205_v59 }
  0xec   : > { %1334 = vmatpush1.bf16.msra.mxu1 %v1333_v60  ;;  %1208 = vmatprep.subr.bf16.mxu0 %v1207_v61 }
  0xed   : > { %1336 = vmatprep.subr.bf16.mxu1 %v1335_v0 }
  0xef   : > { %1210 = vmatpush1.bf16.msra.mxu0 %v1209_v3 }
  0xf0   : > { %1338 = vmatpush1.bf16.msra.mxu1 %v1337_v4 }
  0xf2   : > { %707 = vmatmul.mubr.f32.vlgmr.msra.gmra.mrb[0].mxu0 %v281_v5 }
  0xf3   : > { %861 = vmatmul.mubr.f32.vlgmr.msra.gmra.mrb[0].mxu1 %v281_v5  ;;  %712 = vmatprep.mubr.f32.mxu0 %v286_v6 }
  0xf4   : > { %866 = vmatprep.mubr.f32.mxu1 %v286_v6 }
  0xf6   : > { %713 = vmatmul.mubr.f32.gmra.mrb[2].mxu0 %v285_v7 }
  0xf7   : > { %867 = vmatmul.mubr.f32.gmra.mrb[2].mxu1 %v285_v7 }
 0x1c5   : > { %v708_v19 = vpop.f32.mrb[0].mxu0 }
 0x1c6   : > { %v1339_v20 = vadd.f32 %v708_v19, %v548_v15  ;;  %v862_v21 = vpop.f32.mrb[0].mxu1  ;;  %v710_v22 = vpop.f32.mrb[1].mxu0  ;;  %876 = sbr.rel (%p2236_p9) target bundleno = 463 (0x1cf), region = 48 }
 0x1c7   : > { %v1343_v23 = vadd.f32 %v862_v21, %v556_v16  ;;  %v1340_v24 = vadd.f32 %v710_v22, %v552_v17  ;;  %v864_v25 = vpop.f32.mrb[1].mxu1 }
 0x1c8   : > { %v1344_v26 = vadd.f32 %v864_v25, %v560_v18  ;;  %877 = vst [vmem:[#allocation8] sm:$0xff] (!%p2236_p9), %v1339_v20 }
 0x1c9   : > { %v714_v27 = vpop.f32.mrb[2].mxu0  ;;  %878 = vst [vmem:[#allocation8 + $0x8] sm:$0xff] (!%p2236_p9), %v1340_v24  ;;  %880 = vst [vmem:[#allocation8 + $0x10] sm:$0xff] (!%p2236_p9), %v1343_v23 }
 0x1ca   : > { %v1341_v28 = vadd.f32 %v714_v27, %v548_v15  ;;  %v868_v29 = vpop.f32.mrb[2].mxu1  ;;  %v716_v30 = vpop.f32.mrb[3].mxu0  ;;  %881 = vst [vmem:[#allocation8 + $0x18] sm:$0xff] (!%p2236_p9), %v1344_v26 }
 0x1cb   : > { %v1345_v31 = vadd.f32 %v868_v29, %v556_v16  ;;  %v1342_v32 = vadd.f32 %v716_v30, %v552_v17  ;;  %v870_v33 = vpop.f32.mrb[3].mxu1 }
 0x1cc   : > { %v1346_v34 = vadd.f32 %v870_v33, %v560_v18  ;;  %883 = vst [vmem:[#allocation8 + $0x20] sm:$0xff] (!%p2236_p9), %v1341_v28 }
 0x1cd   : > { %884 = vst [vmem:[#allocation8 + $0x28] sm:$0xff] %v1342_v32  ;;  %886 = vst [vmem:[#allocation8 + $0x30] sm:$0xff] %v1345_v31 }
 0x1ce   : > { %887 = vst [vmem:[#allocation8 + $0x38] sm:$0xff] %v1346_v34 }
 0x1cf PF: > { %p1071_p13 = scmp.ne.s32.totalorder %s1771_s8, 1 }
 0x1d0   : > { %892 = vst [vmem:[#allocation9] sm:$0xff] (!%p1071_p13), %v1339_v20  ;;  %893 = vst [vmem:[#allocation9 + $0x8] sm:$0xff] (!%p1071_p13), %v1340_v24 }
 0x1d1   : > { %891 = sbr.rel (%p1071_p13) target bundleno = 472 (0x1d8), region = 52  ;;  %895 = vst [vmem:[#allocation9 + $0x10] sm:$0xff] (!%p1071_p13), %v1343_v23  ;;  %896 = vst [vmem:[#allocation9 + $0x18] sm:$0xff] (!%p1071_p13), %v1344_v26 }
 0x1d2   : > { %898 = vst [vmem:[#allocation9 + $0x20] sm:$0xff] (!%p1071_p13), %v1341_v28  ;;  %899 = vst [vmem:[#allocation9 + $0x28] sm:$0xff] (!%p1071_p13), %v1342_v32 }
 0x1d3   : > { %901 = vst [vmem:[#allocation9 + $0x30] sm:$0xff] (!%p1071_p13), %v1345_v31  ;;  %902 = vst [vmem:[#allocation9 + $0x38] sm:$0xff] (!%p1071_p13), %v1346_v34 }
 0x1d8 PF: > { %p1072_p6 = scmp.ne.s32.totalorder %s1771_s8, 2 }
 0x1d9   : > { %907 = vst [vmem:[#allocation11] sm:$0xff] (!%p1072_p6), %v1339_v20  ;;  %908 = vst [vmem:[#allocation11 + $0x8] sm:$0xff] (!%p1072_p6), %v1340_v24 }
 0x1da   : > { %906 = sbr.rel (%p1072_p6) target bundleno = 481 (0x1e1), region = 56  ;;  %910 = vst [vmem:[#allocation11 + $0x10] sm:$0xff] (!%p1072_p6), %v1343_v23  ;;  %911 = vst [vmem:[#allocation11 + $0x18] sm:$0xff] (!%p1072_p6), %v1344_v26 }
 0x1db   : > { %913 = vst [vmem:[#allocation11 + $0x20] sm:$0xff] (!%p1072_p6), %v1341_v28  ;;  %914 = vst [vmem:[#allocation11 + $0x28] sm:$0xff] (!%p1072_p6), %v1342_v32 }
 0x1dc   : > { %916 = vst [vmem:[#allocation11 + $0x30] sm:$0xff] (!%p1072_p6), %v1345_v31  ;;  %917 = vst [vmem:[#allocation11 + $0x38] sm:$0xff] (!%p1072_p6), %v1346_v34 }
 0x1e1 PF: > { %p1389_p0 = scmp.eq.s32.totalorder %s1771_s8, 2  ;;  %s1656_s13 = smov [#allocation9]  }
 0x1e2   : > { %s937_s23 = sshll.u32 %s1656_s13, 4  ;;  %s1657_s26 = smov [#allocation8]   ;;  %s938_s23 = int_to_ptr.vmem [resolvable:$true] %s937_s23 }
 0x1e3   : > { %s924_s27 = sshll.u32 %s1657_s26, 4  ;;  %s1524_s28 = scalar_lea.vmem %s938_s23, 1024  ;;  %s925_s27 = int_to_ptr.vmem [resolvable:$true] %s924_s27 }
 0x1e4   : > { %p1525_p4 = scmp.ne.s32.totalorder %s938_s23, %s1524_s28  ;;  %p1531_p12 = scmp.lt.s32.totalorder %s938_s23, %s938_s23 }
 0x1e5   : > { %p1532_p1 = scmp.lt.s32.totalorder %s1524_s28, %s1524_s28 }
 0x1e6   : > { %p1526_p2 = pnand %p1525_p4, %p1389_p0 }
 0x1e7   : > { %p1533_p3 = por %p1532_p1, %p1531_p12 }
 0x1e8   : > { %p1527_p7 = pneg %p1526_p2 }
 0x1ea   : > { %p1534_p5 = pnand %p1533_p3, %p1527_p7 }
 0x1ec   : > { %1537 = shalt.err (!%p1534_p5)
}
 0x1ed   : > { %s1538_s29 = scalar_lea.hbm %s2217_s4, 1024 }
 0x1ee   : > { %p1539_p10 = scmp.ne.s32.totalorder %s2217_s4, %s1538_s29  ;;  %p1544_p9 = scmp.lt.u32.totalorder %s1538_s29, %s2217_s4 }
 0x1f0   : > { %p1540_p11 = pnand %p1539_p10, %p1389_p0 }
 0x1f2   : > { %p1541_p8 = pneg %p1540_p11 }
 0x1f4   : > { %p1546_p13 = pnand %p1544_p9, %p1541_p8 }
 0x1f6   : > { %1549 = shalt.err (!%p1546_p13)
}
 0x1f7   : > { %s1658_s16 = smov 256   ;;  %s1659_s17 = smov 16  }
 0x1f8   : > { %1366 = dma.vmem_to_hbm [thread:$0]  (%p1389_p0), %s938_s23, 1024, %s2217_s4, [#allocation10], %s1658_s16, %s1658_s16, %s1659_s17  }
 0x1f9   : > { %s1550_s18 = scalar_lea.vmem %s925_s27, 1024  ;;  %p1557_p7 = scmp.lt.s32.totalorder %s925_s27, %s925_s27 }
 0x1fa   : > { %p1551_p6 = scmp.ne.s32.totalorder %s925_s27, %s1550_s18  ;;  %p1558_p12 = scmp.lt.s32.totalorder %s1550_s18, %s1550_s18 }
 0x1fc   : > { %p1552_p4 = pnand %p1551_p6, %p1389_p0  ;;  %p1559_p1 = por %p1558_p12, %p1557_p7 }
 0x1fe   : > { %p1553_p2 = pneg %p1552_p4 }
 0x200   : > { %p1560_p3 = pnand %p1559_p1, %p1553_p2 }
 0x202   : > { %1563 = shalt.err (!%p1560_p3)
}
 0x203   : > { %s1564_s12 = scalar_lea.hbm %s2216_s3, 1024 }
 0x204   : > { %p1565_p5 = scmp.ne.s32.totalorder %s2216_s3, %s1564_s12  ;;  %p1570_p8 = scmp.lt.u32.totalorder %s1564_s12, %s2216_s3 }
 0x206   : > { %p1566_p10 = pnand %p1565_p5, %p1389_p0 }
 0x208   : > { %p1567_p11 = pneg %p1566_p10 }
 0x20a   : > { %p1572_p9 = pnand %p1570_p8, %p1567_p11 }
 0x20c   : > { %1575 = shalt.err (!%p1572_p9)
}
 0x20d   : > { %1364 = dma.vmem_to_hbm [thread:$0]  (%p1389_p0), %s925_s27, 1024, %s2216_s3, [#allocation4], %s1658_s16, %s1658_s16, %s1659_s17  }
 0x20e   : > { %s1660_s29 = smov [#allocation11]  }
 0x20f   : > { %s950_s7 = sshll.u32 %s1660_s29, 4  ;;  %s951_s7 = int_to_ptr.vmem [resolvable:$true] %s950_s7 }
 0x210   : > { %s1576_s30 = scalar_lea.vmem %s951_s7, 1024  ;;  %p1583_p2 = scmp.lt.s32.totalorder %s951_s7, %s951_s7 }
 0x211   : > { %p1577_p13 = scmp.ne.s32.totalorder %s951_s7, %s1576_s30  ;;  %p1584_p7 = scmp.lt.s32.totalorder %s1576_s30, %s1576_s30 }
 0x213   : > { %p1578_p6 = pnand %p1577_p13, %p1389_p0  ;;  %p1585_p12 = por %p1584_p7, %p1583_p2 }
 0x215   : > { %p1579_p4 = pneg %p1578_p6 }
 0x217   : > { %p1586_p1 = pnand %p1585_p12, %p1579_p4 }
 0x219   : > { %1589 = shalt.err (!%p1586_p1)
}
 0x21a   : > { %s1590_s14 = scalar_lea.hbm %s2218_s5, 1024 }
 0x21b   : > { %p1591_p3 = scmp.ne.s32.totalorder %s2218_s5, %s1590_s14  ;;  %p1596_p11 = scmp.lt.u32.totalorder %s1590_s14, %s2218_s5 }
 0x21d   : > { %p1592_p5 = pnand %p1591_p3, %p1389_p0 }
 0x21f   : > { %p1593_p10 = pneg %p1592_p5 }
 0x221   : > { %p1598_p8 = pnand %p1596_p11, %p1593_p10 }
 0x223   : > { %1601 = shalt.err (!%p1598_p8)
}
 0x224   : > { %1368 = dma.vmem_to_hbm [thread:$0]  (%p1389_p0), %s951_s7, 1024, %s2218_s5, [#allocation10], %s1658_s16, %s1658_s16, %s1659_s17  }
 0x225   : > { %1627 = dma.done.wait (%p1389_p0), [#allocation4], 1024  }
 0x226   : > { %1629 = vsyncadd (%p1389_p0), [#allocation4], 4294966272 }
 0x227   : > { %1631 = dma.done.wait (%p1389_p0), [#allocation10], 2048  }
 0x228   : > { %1633 = vsyncadd (%p1389_p0), [#allocation10], 4294965248 }
 0x229 PF: > { %p19_p9 = scmp.ge.s32.totalorder %s1712_s22, 5   ;;  %s2237_s18 = smov %s1640_s19 }
 0x22a   : > { %s2238_s19 = smov %s1644_s20  ;;  %s2239_s20 = smov %s1721_s25 }
 0x22b   : > { %s2240_s21 = smov %s1712_s22  ;;  %21 = sbr.rel (!%p19_p9) target bundleno = 6 (0x6), region = 122 }
 0x232   :  { %974 = vsyncpa [#allocation3], 1 }
 0x233   :  { %976 = vsyncpa [#allocation3 + $0x1], 1 }
 0x234   :  { %977 = vsyncpa [#allocation6], 1 }
 0x235   :  { %979 = vsyncpa [#allocation6 + $0x1], 1 }
 0x236   :  { %980 = vsyncpa [#allocation4], 1 }
 0x237   :  { %982 = vsyncpa [#allocation4 + $0x1], 1 }
 0x238   :  { %983 = vsyncpa [#allocation10], 1 }

</bundles_post_ra>
